<compile_context>
chip_gen: v5e
topology: v5e:2x2
jax: 0.10.0
libtpu: 0.0.40
codegen_flags: <defaults>
</compile_context>

<pallas_src>
import functools

import jax
import jax.numpy as jnp
from jax.experimental import pallas as pl
from jax.experimental.pallas import tpu as pltpu

# Hyper-parameters shared by all four layers (fixed by the nn.Module).
K = 4          # kernel size
STRIDE = 2
PAD = 2
C_PAD = 128    # lane-dense channel padding
C_IN = 64      # Conv1d(64 -> 32)
C_OUT = 64     # ConvTranspose1d(32 -> 64)

# Set to jnp.bfloat16 for ~3x MXU throughput / half the weight DMA on v5e/v6e/v7x
# (tolerance vs. the f32 reference then loosens to ~1e-2).
MXU_DTYPE = jnp.float32


def _round_up(n, m):
    return ((n + m - 1) // m) * m


# ------------------------------ fused kernel ----------------------------------

def _lis2img_kernel(x_ref, w1, b1, w2, b2, w3, b3, w4, b4, o_ref,
                    s0, s1, s2, s3, s4, *, n_b, dims):
    """All 4 layers for a block of n_b batch elements; intermediates stay in VMEM.

    x_ref : (n_b, Lx, 128)  input, already front-padded with PAD zero rows
    w1,w2 : (K*128, 128)    fused conv weight slabs   (tap-major on the rows)
    w3,w4 : (2*128, 2*128)  fused transposed-conv slabs ([even|odd] on the cols)
    b1,b2 : (1, 128)        biases;  b3,b4 : (1, 256) = [bias | bias]
    s0..s4: VMEM staging / zero-haloed intermediates (all 2-D, 128 lanes)
    """
    L1, L2, L3 = dims

    # Zero the halo rows once per grid step; real rows are overwritten per element.
    s1[...] = jnp.zeros_like(s1)
    s4[...] = jnp.zeros_like(s4)

    for b in range(n_b):                       # static unroll over this batch block
        # Stage element b so every gather below is a plain 2-D strided ref access.
        s0[...] = x_ref[b]

        # ---- encoder Conv1d #1 (64->32, k4, s2, p2) + ReLU: one fused matmul ----
        g = jnp.concatenate(
            [s0[pl.ds(k, L1, stride=STRIDE), :] for k in range(K)], axis=1)
        a = jnp.dot(g.astype(MXU_DTYPE), w1[...],
                    preferred_element_type=jnp.float32) + b1[...]
        a = jnp.maximum(a, 0.0)
        s1[pl.ds(PAD, L1), :] = a              # place after the PAD zero-halo rows

        # ---- encoder Conv1d #2 (32->32) + ReLU ----
        g = jnp.concatenate(
            [s1[pl.ds(k, L2, stride=STRIDE), :] for k in range(K)], axis=1)
        a = jnp.dot(g.astype(MXU_DTYPE), w2[...],
                    preferred_element_type=jnp.float32) + b2[...]
        a = jnp.maximum(a, 0.0)
        s2[pl.ds(0, L2), :] = a

        # ---- decoder ConvTranspose1d #1 (32->32) + ReLU (polyphase) ----
        # G[s] = [x[s+1] | x[s]]  ->  one matmul gives [even-phase | odd-phase].
        g = jnp.concatenate(
            [s2[pl.ds(1, L2 - 1), :], s2[pl.ds(0, L2 - 1), :]], axis=1)
        y = jnp.dot(g.astype(MXU_DTYPE), w3[...],
                    preferred_element_type=jnp.float32) + b3[...]
        y = jnp.maximum(y, 0.0)
        s3[pl.ds(0, L2 - 1, stride=STRIDE), :] = y[:, :C_PAD]   # rows 0,2,4,...
        s3[pl.ds(1, L2 - 1, stride=STRIDE), :] = y[:, C_PAD:]   # rows 1,3,5,...

        # ---- decoder ConvTranspose1d #2 (32->64), no ReLU ----
        g = jnp.concatenate(
            [s3[pl.ds(1, L3 - 1), :], s3[pl.ds(0, L3 - 1), :]], axis=1)
        y = jnp.dot(g.astype(MXU_DTYPE), w4[...],
                    preferred_element_type=jnp.float32) + b4[...]
        s4[pl.ds(0, L3 - 1, stride=STRIDE), :] = y[:, :C_PAD]
        s4[pl.ds(1, L3 - 1, stride=STRIDE), :] = y[:, C_PAD:]

        o_ref[b] = s4[...]                     # lane-dense (L4p, 128) store


# ----------------------- one-time weight packing (outside jit) -----------------

def pack_params(params):
    """Pack PyTorch-layout weights into fused MXU slabs.  Call ONCE, reuse forever."""

    def conv_slab(w):                       # Conv1d (C_out, C_in, K) -> (K*128, 128)
        k = w.shape[2]
        wk = jnp.transpose(w, (2, 1, 0))                    # (K, C_in, C_out)
        wk = jnp.pad(wk, ((0, 0), (0, C_PAD - wk.shape[1]), (0, C_PAD - wk.shape[2])))
        return wk.reshape(k * C_PAD, C_PAD).astype(MXU_DTYPE)

    def convt_slab(w):                      # ConvT (C_in, C_out, K) -> (256, 256)
        c_in, c_out, _ = w.shape
        slab = jnp.zeros((2 * C_PAD, 2 * C_PAD), jnp.float32)
        # rows [0:128) multiply x[s+1], rows [128:256) multiply x[s];
        # cols [0:128) = even output rows (taps 0,2), cols [128:256) = odd (taps 1,3)
        slab = slab.at[:c_in, :c_out].set(w[:, :, 0])
        slab = slab.at[C_PAD:C_PAD + c_in, :c_out].set(w[:, :, 2])
        slab = slab.at[:c_in, C_PAD:C_PAD + c_out].set(w[:, :, 1])
        slab = slab.at[C_PAD:C_PAD + c_in, C_PAD:C_PAD + c_out].set(w[:, :, 3])
        return slab.astype(MXU_DTYPE)

    def bias1(b):
        return jnp.pad(b, (0, C_PAD - b.shape[0])).reshape(1, C_PAD).astype(jnp.float32)

    def bias2(b):
        bp = jnp.pad(b, (0, C_PAD - b.shape[0]))
        return jnp.concatenate([bp, bp]).reshape(1, 2 * C_PAD).astype(jnp.float32)

    return {
        "w1": conv_slab(params["enc1_w"]),  "b1": bias1(params["enc1_b"]),
        "w2": conv_slab(params["enc2_w"]),  "b2": bias1(params["enc2_b"]),
        "w3": convt_slab(params["dec1_w"]), "b3": bias2(params["dec1_b"]),
        "w4": convt_slab(params["dec2_w"]), "b4": bias2(params["dec2_b"]),
    }


# --------------------------------- forward ------------------------------------

@jax.jit
def lis2img_forward(packed, x):
    """x: (N, 64, L) NCL  ->  (N, 64, L_out) NCL — PyTorch Lis2Img.forward."""
    N, c_in, L = x.shape

    # Per-layer output lengths (PyTorch formulas).
    L1 = (L + 2 * PAD - K) // STRIDE + 1
    L2 = (L1 + 2 * PAD - K) // STRIDE + 1
    L3 = (L2 - 1) * STRIDE - 2 * PAD + K
    L4 = (L3 - 1) * STRIDE - 2 * PAD + K
    L4p = _round_up(L4, 8)

    # Zero-haloed buffer lengths: front PAD rows + data, long enough for the last
    # gather index (STRIDE*L_out + K - PAD - 1), rounded to 8 sublanes.
    Lx = _round_up(max(PAD + L, STRIDE * L1 + K - PAD), 8)
    S1 = _round_up(max(PAD + L1, STRIDE * L2 + K - PAD), 8)
    S2 = _round_up(L2, 8)
    S3 = _round_up(L3, 8)

    n_b = N if N <= 4 else 4
    n_pad = _round_up(N, n_b)

    # Model-boundary conversion only: NCL -> channels-last, channels padded to 128
    # lanes, PAD zero rows in front + trailing zeros (conv "same"-style halo).
    x_cl = jnp.transpose(x, (0, 2, 1)).astype(jnp.float32)
    x_cl = jnp.pad(x_cl, ((0, n_pad - N), (PAD, Lx - PAD - L), (0, C_PAD - c_in)))

    kernel = functools.partial(_lis2img_kernel, n_b=n_b, dims=(L1, L2, L3))

    out = pl.pallas_call(
        kernel,
        out_shape=jax.ShapeDtypeStruct((n_pad, L4p, C_PAD), jnp.float32),
        grid_spec=pltpu.PrefetchScalarGridSpec(
            num_scalar_prefetch=0,
            grid=(n_pad // n_b,),
            in_specs=[
                pl.BlockSpec((n_b, Lx, C_PAD), lambda g: (g, 0, 0)),
                pl.BlockSpec((K * C_PAD, C_PAD), lambda g: (0, 0)),
                pl.BlockSpec((1, C_PAD), lambda g: (0, 0)),
                pl.BlockSpec((K * C_PAD, C_PAD), lambda g: (0, 0)),
                pl.BlockSpec((1, C_PAD), lambda g: (0, 0)),
                pl.BlockSpec((2 * C_PAD, 2 * C_PAD), lambda g: (0, 0)),
                pl.BlockSpec((1, 2 * C_PAD), lambda g: (0, 0)),
                pl.BlockSpec((2 * C_PAD, 2 * C_PAD), lambda g: (0, 0)),
                pl.BlockSpec((1, 2 * C_PAD), lambda g: (0, 0)),
            ],
            out_specs=pl.BlockSpec((n_b, L4p, C_PAD), lambda g: (g, 0, 0)),
            scratch_shapes=[
                pltpu.VMEM((Lx, C_PAD), jnp.float32),    # s0: staged input element
                pltpu.VMEM((S1, C_PAD), jnp.float32),    # s1: enc1 out (+ zero halo)
                pltpu.VMEM((S2, C_PAD), jnp.float32),    # s2: enc2 out
                pltpu.VMEM((S3, C_PAD), jnp.float32),    # s3: dec1 out (interleaved)
                pltpu.VMEM((L4p, C_PAD), jnp.float32),   # s4: dec2 out (interleaved)
            ],
        ),
        compiler_params=pltpu.CompilerParams(
            dimension_semantics=("parallel",)),          # batch blocks across TCs
    )(x_cl, packed["w1"], packed["b1"], packed["w2"], packed["b2"],
      packed["w3"], packed["b3"], packed["w4"], packed["b4"])

    # (Reference does x.transpose(1,2) then x.transpose(2,1): a no-op, omitted.)
    return jnp.transpose(out[:N, :L4, :C_OUT], (0, 2, 1))


# --------------------------------- params -------------------------------------

def init_params(key):
    def uni(k, shape, fan_in):
        bound = 1.0 / (fan_in ** 0.5)
        return jax.random.uniform(k, shape, jnp.float32, -bound, bound)

    ks = jax.random.split(key, 8)
    return {
        # encoder: Conv1d weights are (C_out, C_in, K)
        "enc1_w": uni(ks[0], (32, 64, 4), 64 * 4),
        "enc1_b": uni(ks[1], (32,), 64 * 4),
        "enc2_w": uni(ks[2], (32, 32, 4), 32 * 4),
        "enc2_b": uni(ks[3], (32,), 32 * 4),
        # decoder: ConvTranspose1d weights are (C_in, C_out, K)
        "dec1_w": uni(ks[4], (32, 32, 4), 32 * 4),
        "dec1_b": uni(ks[5], (32,), 32 * 4),
        "dec2_w": uni(ks[6], (32, 64, 4), 32 * 4),
        "dec2_b": uni(ks[7], (64,), 32 * 4),
    }


# ---------------------------- reference (pure XLA) -----------------------------

def _ref_conv1d(x, w, b, stride, padding, relu):
    y = jax.lax.conv_general_dilated(
        x, w, window_strides=(stride,), padding=[(padding, padding)],
        dimension_numbers=("NCH", "OIH", "NCH"))
    y = y + b[None, :, None]
    return jnp.maximum(y, 0.0) if relu else y


def _ref_conv_transpose1d(x, w, b, stride, padding, relu):
    k = w.shape[-1]
    w_conv = jnp.transpose(jnp.flip(w, -1), (1, 0, 2))
    y = jax.lax.conv_general_dilated(
        x, w_conv, window_strides=(1,),
        padding=[(k - 1 - padding, k - 1 - padding)],
        lhs_dilation=(stride,),
        dimension_numbers=("NCH", "OIH", "NCH"))
    y = y + b[None, :, None]
    return jnp.maximum(y, 0.0) if relu else y


def lis2img_ref(params, x):
    x = _ref_conv1d(x, params["enc1_w"], params["enc1_b"], 2, 2, True)
    x = _ref_conv1d(x, params["enc2_w"], params["enc2_b"], 2, 2, True)
    x = _ref_conv_transpose1d(x, params["dec1_w"], params["dec1_b"], 2, 2, True)
    x = _ref_conv_transpose1d(x, params["dec2_w"], params["dec2_b"], 2, 2, False)
    return x


# ----------------------------------- main --------------------------------------

if __name__ == "__main__":
    key = jax.random.PRNGKey(0)
    pkey, xkey = jax.random.split(key)
    params = init_params(pkey)

    # Weights packed ONCE, outside the jitted per-call path (review item #1).
    packed = pack_params(params)

    # input: (batch=2, channels=64, length=16) — NCL, matching nn.Conv1d(64, ...)
    x = jax.random.normal(xkey, (2, 64, 16), dtype=jnp.float32)

    out = jax.block_until_ready(lis2img_forward(packed, x))
    assert out.shape == (2, 64, 14), out.shape

    ref = jax.block_until_ready(lis2img_ref(params, x))
    tol = 1e-4 if MXU_DTYPE == jnp.float32 else 2e-2
    assert jnp.allclose(out, ref, atol=tol, rtol=tol), float(
        jnp.max(jnp.abs(out - ref)))

    print("KERNEL_OK")
</pallas_src>

<mosaic_0001>
module attributes {stable_mosaic.version = 11 : i64} {
  func.func @_lis2img_kernel(%arg0: i32, %arg1: memref<2x24x128xf32, #tpu.memory_space<vmem>>, %arg2: memref<512x128xf32, #tpu.memory_space<vmem>>, %arg3: memref<1x128xf32, #tpu.memory_space<vmem>>, %arg4: memref<512x128xf32, #tpu.memory_space<vmem>>, %arg5: memref<1x128xf32, #tpu.memory_space<vmem>>, %arg6: memref<256x256xf32, #tpu.memory_space<vmem>>, %arg7: memref<1x256xf32, #tpu.memory_space<vmem>>, %arg8: memref<256x256xf32, #tpu.memory_space<vmem>>, %arg9: memref<1x256xf32, #tpu.memory_space<vmem>>, %arg10: memref<2x16x128xf32, #tpu.memory_space<vmem>>, %arg11: memref<24x128xf32, #tpu.memory_space<vmem>>, %arg12: memref<16x128xf32, #tpu.memory_space<vmem>>, %arg13: memref<8x128xf32, #tpu.memory_space<vmem>>, %arg14: memref<8x128xf32, #tpu.memory_space<vmem>>, %arg15: memref<16x128xf32, #tpu.memory_space<vmem>>) attributes {dimension_semantics = [#tpu.dimension_semantics<parallel>], iteration_bounds = array<i64: 1>, scalar_prefetch = 0 : i64, scratch_operands = 5 : i64, tpu.core_type = #tpu.core_type<tc>, window_params = [{transform_indices = @transform_0, window_bounds = array<i64: 2, 24, 128>}, {pipeline_mode = #tpu.pipeline_mode<synchronous>, transform_indices = @transform_1, window_bounds = array<i64: 512, 128>}, {pipeline_mode = #tpu.pipeline_mode<synchronous>, transform_indices = @transform_2, window_bounds = array<i64: 1, 128>}, {pipeline_mode = #tpu.pipeline_mode<synchronous>, transform_indices = @transform_3, window_bounds = array<i64: 512, 128>}, {pipeline_mode = #tpu.pipeline_mode<synchronous>, transform_indices = @transform_4, window_bounds = array<i64: 1, 128>}, {pipeline_mode = #tpu.pipeline_mode<synchronous>, transform_indices = @transform_5, window_bounds = array<i64: 256, 256>}, {pipeline_mode = #tpu.pipeline_mode<synchronous>, transform_indices = @transform_6, window_bounds = array<i64: 1, 256>}, {pipeline_mode = #tpu.pipeline_mode<synchronous>, transform_indices = @transform_7, window_bounds = array<i64: 256, 256>}, {pipeline_mode = #tpu.pipeline_mode<synchronous>, transform_indices = @transform_8, window_bounds = array<i64: 1, 256>}, {transform_indices = @transform_9, window_bounds = array<i64: 2, 16, 128>}]} {
    %cst = arith.constant 0.000000e+00 : f32
    %0 = vector.broadcast %cst : f32 to vector<16x128xf32>
    %c0 = arith.constant 0 : index
    %c0_0 = arith.constant 0 : index
    %1 = vector.load %arg12[%c0, %c0_0] : memref<16x128xf32, #tpu.memory_space<vmem>>, vector<16x128xf32>
    tpu.vector_store %arg12[%c0, %c0_0], %0 {strides = array<i32>} : memref<16x128xf32, #tpu.memory_space<vmem>>, vector<16x128xf32>,
    %cst_1 = arith.constant 0.000000e+00 : f32
    %2 = vector.broadcast %cst_1 : f32 to vector<16x128xf32>
    %c0_2 = arith.constant 0 : index
    %c0_3 = arith.constant 0 : index
    %3 = vector.load %arg15[%c0_2, %c0_3] : memref<16x128xf32, #tpu.memory_space<vmem>>, vector<16x128xf32>
    tpu.vector_store %arg15[%c0_2, %c0_3], %2 {strides = array<i32>} : memref<16x128xf32, #tpu.memory_space<vmem>>, vector<16x128xf32>,
    %c0_4 = arith.constant 0 : index
    %c0_5 = arith.constant 0 : index
    %c0_6 = arith.constant 0 : index
    %4 = vector.load %arg1[%c0_4, %c0_5, %c0_6] : memref<2x24x128xf32, #tpu.memory_space<vmem>>, vector<1x24x128xf32>
    %5 = vector.shape_cast %4 : vector<1x24x128xf32> to vector<24x128xf32>
    %c0_7 = arith.constant 0 : index
    %c0_8 = arith.constant 0 : index
    %6 = vector.load %arg11[%c0_7, %c0_8] : memref<24x128xf32, #tpu.memory_space<vmem>>, vector<24x128xf32>
    tpu.vector_store %arg11[%c0_7, %c0_8], %5 {strides = array<i32>} : memref<24x128xf32, #tpu.memory_space<vmem>>, vector<24x128xf32>,
    %c0_9 = arith.constant 0 : index
    %c0_10 = arith.constant 0 : index
    %7 = tpu.strided_load %arg11[%c0_9, %c0_10] {strides = array<i32: 2, 1>} : memref<24x128xf32, #tpu.memory_space<vmem>>, vector<9x128xf32>
    %c1 = arith.constant 1 : index
    %c0_11 = arith.constant 0 : index
    %8 = tpu.strided_load %arg11[%c1, %c0_11] {strides = array<i32: 2, 1>} : memref<24x128xf32, #tpu.memory_space<vmem>>, vector<9x128xf32>
    %c2 = arith.constant 2 : index
    %c0_12 = arith.constant 0 : index
    %9 = tpu.strided_load %arg11[%c2, %c0_12] {strides = array<i32: 2, 1>} : memref<24x128xf32, #tpu.memory_space<vmem>>, vector<9x128xf32>
    %c3 = arith.constant 3 : index
    %c0_13 = arith.constant 0 : index
    %10 = tpu.strided_load %arg11[%c3, %c0_13] {strides = array<i32: 2, 1>} : memref<24x128xf32, #tpu.memory_space<vmem>>, vector<9x128xf32>
    %11 = tpu.concatenate %7, %8, %9, %10 in 1 : vector<9x128xf32>, vector<9x128xf32>, vector<9x128xf32>, vector<9x128xf32> -> vector<9x512xf32>
    %c0_14 = arith.constant 0 : index
    %c0_15 = arith.constant 0 : index
    %12 = vector.load %arg2[%c0_14, %c0_15] : memref<512x128xf32, #tpu.memory_space<vmem>>, vector<512x128xf32>
    %cst_16 = arith.constant dense<0.000000e+00> : vector<9x128xf32>
    %13 = tpu.matmul %11, %12, %cst_16 {dimension_numbers = #tpu.dot_dimension_numbers<[1], [0], [0], [1], [0, 0, 1, 1], [], []>} : vector<9x512xf32>, vector<512x128xf32>, vector<9x128xf32> -> vector<9x128xf32>
    %c0_17 = arith.constant 0 : index
    %c0_18 = arith.constant 0 : index
    %14 = vector.load %arg3[%c0_17, %c0_18] : memref<1x128xf32, #tpu.memory_space<vmem>>, vector<1x128xf32>
    %15 = vector.broadcast %14 : vector<1x128xf32> to vector<9x128xf32>
    %16 = arith.addf %13, %15 : vector<9x128xf32>
    %cst_19 = arith.constant 0.000000e+00 : f32
    %17 = vector.broadcast %cst_19 : f32 to vector<9x128xf32>
    %18 = arith.maximumf %16, %17 : vector<9x128xf32>
    %c2_20 = arith.constant 2 : index
    %c0_21 = arith.constant 0 : index
    %19 = vector.load %arg12[%c2_20, %c0_21] : memref<16x128xf32, #tpu.memory_space<vmem>>, vector<9x128xf32>
    tpu.vector_store %arg12[%c2_20, %c0_21], %18 {strides = array<i32>} : memref<16x128xf32, #tpu.memory_space<vmem>>, vector<9x128xf32>,
    %c0_22 = arith.constant 0 : index
    %c0_23 = arith.constant 0 : index
    %20 = tpu.strided_load %arg12[%c0_22, %c0_23] {strides = array<i32: 2, 1>} : memref<16x128xf32, #tpu.memory_space<vmem>>, vector<5x128xf32>
    %c1_24 = arith.constant 1 : index
    %c0_25 = arith.constant 0 : index
    %21 = tpu.strided_load %arg12[%c1_24, %c0_25] {strides = array<i32: 2, 1>} : memref<16x128xf32, #tpu.memory_space<vmem>>, vector<5x128xf32>
    %c2_26 = arith.constant 2 : index
    %c0_27 = arith.constant 0 : index
    %22 = tpu.strided_load %arg12[%c2_26, %c0_27] {strides = array<i32: 2, 1>} : memref<16x128xf32, #tpu.memory_space<vmem>>, vector<5x128xf32>
    %c3_28 = arith.constant 3 : index
    %c0_29 = arith.constant 0 : index
    %23 = tpu.strided_load %arg12[%c3_28, %c0_29] {strides = array<i32: 2, 1>} : memref<16x128xf32, #tpu.memory_space<vmem>>, vector<5x128xf32>
    %24 = tpu.concatenate %20, %21, %22, %23 in 1 : vector<5x128xf32>, vector<5x128xf32>, vector<5x128xf32>, vector<5x128xf32> -> vector<5x512xf32>
    %c0_30 = arith.constant 0 : index
    %c0_31 = arith.constant 0 : index
    %25 = vector.load %arg4[%c0_30, %c0_31] : memref<512x128xf32, #tpu.memory_space<vmem>>, vector<512x128xf32>
    %cst_32 = arith.constant dense<0.000000e+00> : vector<5x128xf32>
    %26 = tpu.matmul %24, %25, %cst_32 {dimension_numbers = #tpu.dot_dimension_numbers<[1], [0], [0], [1], [0, 0, 1, 1], [], []>} : vector<5x512xf32>, vector<512x128xf32>, vector<5x128xf32> -> vector<5x128xf32>
    %c0_33 = arith.constant 0 : index
    %c0_34 = arith.constant 0 : index
    %27 = vector.load %arg5[%c0_33, %c0_34] : memref<1x128xf32, #tpu.memory_space<vmem>>, vector<1x128xf32>
    %28 = vector.broadcast %27 : vector<1x128xf32> to vector<5x128xf32>
    %29 = arith.addf %26, %28 : vector<5x128xf32>
    %cst_35 = arith.constant 0.000000e+00 : f32
    %30 = vector.broadcast %cst_35 : f32 to vector<5x128xf32>
    %31 = arith.maximumf %29, %30 : vector<5x128xf32>
    %c0_36 = arith.constant 0 : index
    %c0_37 = arith.constant 0 : index
    %32 = vector.load %arg13[%c0_36, %c0_37] : memref<8x128xf32, #tpu.memory_space<vmem>>, vector<5x128xf32>
    tpu.vector_store %arg13[%c0_36, %c0_37], %31 {strides = array<i32>} : memref<8x128xf32, #tpu.memory_space<vmem>>, vector<5x128xf32>,
    %c1_38 = arith.constant 1 : index
    %c0_39 = arith.constant 0 : index
    %33 = vector.load %arg13[%c1_38, %c0_39] : memref<8x128xf32, #tpu.memory_space<vmem>>, vector<4x128xf32>
    %c0_40 = arith.constant 0 : index
    %c0_41 = arith.constant 0 : index
    %34 = vector.load %arg13[%c0_40, %c0_41] : memref<8x128xf32, #tpu.memory_space<vmem>>, vector<4x128xf32>
    %35 = tpu.concatenate %33, %34 in 1 : vector<4x128xf32>, vector<4x128xf32> -> vector<4x256xf32>
    %c0_42 = arith.constant 0 : index
    %c0_43 = arith.constant 0 : index
    %36 = vector.load %arg6[%c0_42, %c0_43] : memref<256x256xf32, #tpu.memory_space<vmem>>, vector<256x256xf32>
    %cst_44 = arith.constant dense<0.000000e+00> : vector<4x256xf32>
    %37 = tpu.matmul %35, %36, %cst_44 {dimension_numbers = #tpu.dot_dimension_numbers<[1], [0], [0], [1], [0, 0, 1, 1], [], []>} : vector<4x256xf32>, vector<256x256xf32>, vector<4x256xf32> -> vector<4x256xf32>
    %c0_45 = arith.constant 0 : index
    %c0_46 = arith.constant 0 : index
    %38 = vector.load %arg7[%c0_45, %c0_46] : memref<1x256xf32, #tpu.memory_space<vmem>>, vector<1x256xf32>
    %39 = vector.broadcast %38 : vector<1x256xf32> to vector<4x256xf32>
    %40 = arith.addf %37, %39 : vector<4x256xf32>
    %cst_47 = arith.constant 0.000000e+00 : f32
    %41 = vector.broadcast %cst_47 : f32 to vector<4x256xf32>
    %42 = arith.maximumf %40, %41 : vector<4x256xf32>
    %43 = vector.extract_strided_slice %42 {offsets = [0, 0], sizes = [4, 128], strides = [1, 1]} : vector<4x256xf32> to vector<4x128xf32>
    %c0_48 = arith.constant 0 : index
    %c0_49 = arith.constant 0 : index
    %44 = tpu.strided_load %arg14[%c0_48, %c0_49] {strides = array<i32: 2, 1>} : memref<8x128xf32, #tpu.memory_space<vmem>>, vector<4x128xf32>
    tpu.strided_store %arg14[%c0_48, %c0_49], %43 {strides = array<i32: 2, 1>} : memref<8x128xf32, #tpu.memory_space<vmem>>, vector<4x128xf32>
    %45 = vector.extract_strided_slice %42 {offsets = [0, 128], sizes = [4, 128], strides = [1, 1]} : vector<4x256xf32> to vector<4x128xf32>
    %c1_50 = arith.constant 1 : index
    %c0_51 = arith.constant 0 : index
    %46 = tpu.strided_load %arg14[%c1_50, %c0_51] {strides = array<i32: 2, 1>} : memref<8x128xf32, #tpu.memory_space<vmem>>, vector<4x128xf32>
    tpu.strided_store %arg14[%c1_50, %c0_51], %45 {strides = array<i32: 2, 1>} : memref<8x128xf32, #tpu.memory_space<vmem>>, vector<4x128xf32>
    %c1_52 = arith.constant 1 : index
    %c0_53 = arith.constant 0 : index
    %47 = vector.load %arg14[%c1_52, %c0_53] : memref<8x128xf32, #tpu.memory_space<vmem>>, vector<7x128xf32>
    %c0_54 = arith.constant 0 : index
    %c0_55 = arith.constant 0 : index
    %48 = vector.load %arg14[%c0_54, %c0_55] : memref<8x128xf32, #tpu.memory_space<vmem>>, vector<7x128xf32>
    %49 = tpu.concatenate %47, %48 in 1 : vector<7x128xf32>, vector<7x128xf32> -> vector<7x256xf32>
    %c0_56 = arith.constant 0 : index
    %c0_57 = arith.constant 0 : index
    %50 = vector.load %arg8[%c0_56, %c0_57] : memref<256x256xf32, #tpu.memory_space<vmem>>, vector<256x256xf32>
    %cst_58 = arith.constant dense<0.000000e+00> : vector<7x256xf32>
    %51 = tpu.matmul %49, %50, %cst_58 {dimension_numbers = #tpu.dot_dimension_numbers<[1], [0], [0], [1], [0, 0, 1, 1], [], []>} : vector<7x256xf32>, vector<256x256xf32>, vector<7x256xf32> -> vector<7x256xf32>
    %c0_59 = arith.constant 0 : index
    %c0_60 = arith.constant 0 : index
    %52 = vector.load %arg9[%c0_59, %c0_60] : memref<1x256xf32, #tpu.memory_space<vmem>>, vector<1x256xf32>
    %53 = vector.broadcast %52 : vector<1x256xf32> to vector<7x256xf32>
    %54 = arith.addf %51, %53 : vector<7x256xf32>
    %55 = vector.extract_strided_slice %54 {offsets = [0, 0], sizes = [7, 128], strides = [1, 1]} : vector<7x256xf32> to vector<7x128xf32>
    %c0_61 = arith.constant 0 : index
    %c0_62 = arith.constant 0 : index
    %56 = tpu.strided_load %arg15[%c0_61, %c0_62] {strides = array<i32: 2, 1>} : memref<16x128xf32, #tpu.memory_space<vmem>>, vector<7x128xf32>
    tpu.strided_store %arg15[%c0_61, %c0_62], %55 {strides = array<i32: 2, 1>} : memref<16x128xf32, #tpu.memory_space<vmem>>, vector<7x128xf32>
    %57 = vector.extract_strided_slice %54 {offsets = [0, 128], sizes = [7, 128], strides = [1, 1]} : vector<7x256xf32> to vector<7x128xf32>
    %c1_63 = arith.constant 1 : index
    %c0_64 = arith.constant 0 : index
    %58 = tpu.strided_load %arg15[%c1_63, %c0_64] {strides = array<i32: 2, 1>} : memref<16x128xf32, #tpu.memory_space<vmem>>, vector<7x128xf32>
    tpu.strided_store %arg15[%c1_63, %c0_64], %57 {strides = array<i32: 2, 1>} : memref<16x128xf32, #tpu.memory_space<vmem>>, vector<7x128xf32>
    %c0_65 = arith.constant 0 : index
    %c0_66 = arith.constant 0 : index
    %59 = vector.load %arg15[%c0_65, %c0_66] : memref<16x128xf32, #tpu.memory_space<vmem>>, vector<16x128xf32>
    %c0_67 = arith.constant 0 : index
    %c0_68 = arith.constant 0 : index
    %c0_69 = arith.constant 0 : index
    %60 = vector.load %arg10[%c0_67, %c0_68, %c0_69] : memref<2x16x128xf32, #tpu.memory_space<vmem>>, vector<1x16x128xf32>
    %61 = vector.shape_cast %60 : vector<1x16x128xf32> to vector<16x128xf32>
    %62 = vector.shape_cast %59 : vector<16x128xf32> to vector<1x16x128xf32>
    tpu.vector_store %arg10[%c0_67, %c0_68, %c0_69], %62 {strides = array<i32>} : memref<2x16x128xf32, #tpu.memory_space<vmem>>, vector<1x16x128xf32>,
    %c1_70 = arith.constant 1 : index
    %c0_71 = arith.constant 0 : index
    %c0_72 = arith.constant 0 : index
    %63 = vector.load %arg1[%c1_70, %c0_71, %c0_72] : memref<2x24x128xf32, #tpu.memory_space<vmem>>, vector<1x24x128xf32>
    %64 = vector.shape_cast %63 : vector<1x24x128xf32> to vector<24x128xf32>
    %c0_73 = arith.constant 0 : index
    %c0_74 = arith.constant 0 : index
    %65 = vector.load %arg11[%c0_73, %c0_74] : memref<24x128xf32, #tpu.memory_space<vmem>>, vector<24x128xf32>
    tpu.vector_store %arg11[%c0_73, %c0_74], %64 {strides = array<i32>} : memref<24x128xf32, #tpu.memory_space<vmem>>, vector<24x128xf32>,
    %c0_75 = arith.constant 0 : index
    %c0_76 = arith.constant 0 : index
    %66 = tpu.strided_load %arg11[%c0_75, %c0_76] {strides = array<i32: 2, 1>} : memref<24x128xf32, #tpu.memory_space<vmem>>, vector<9x128xf32>
    %c1_77 = arith.constant 1 : index
    %c0_78 = arith.constant 0 : index
    %67 = tpu.strided_load %arg11[%c1_77, %c0_78] {strides = array<i32: 2, 1>} : memref<24x128xf32, #tpu.memory_space<vmem>>, vector<9x128xf32>
    %c2_79 = arith.constant 2 : index
    %c0_80 = arith.constant 0 : index
    %68 = tpu.strided_load %arg11[%c2_79, %c0_80] {strides = array<i32: 2, 1>} : memref<24x128xf32, #tpu.memory_space<vmem>>, vector<9x128xf32>
    %c3_81 = arith.constant 3 : index
    %c0_82 = arith.constant 0 : index
    %69 = tpu.strided_load %arg11[%c3_81, %c0_82] {strides = array<i32: 2, 1>} : memref<24x128xf32, #tpu.memory_space<vmem>>, vector<9x128xf32>
    %70 = tpu.concatenate %66, %67, %68, %69 in 1 : vector<9x128xf32>, vector<9x128xf32>, vector<9x128xf32>, vector<9x128xf32> -> vector<9x512xf32>
    %c0_83 = arith.constant 0 : index
    %c0_84 = arith.constant 0 : index
    %71 = vector.load %arg2[%c0_83, %c0_84] : memref<512x128xf32, #tpu.memory_space<vmem>>, vector<512x128xf32>
    %cst_85 = arith.constant dense<0.000000e+00> : vector<9x128xf32>
    %72 = tpu.matmul %70, %71, %cst_85 {dimension_numbers = #tpu.dot_dimension_numbers<[1], [0], [0], [1], [0, 0, 1, 1], [], []>} : vector<9x512xf32>, vector<512x128xf32>, vector<9x128xf32> -> vector<9x128xf32>
    %c0_86 = arith.constant 0 : index
    %c0_87 = arith.constant 0 : index
    %73 = vector.load %arg3[%c0_86, %c0_87] : memref<1x128xf32, #tpu.memory_space<vmem>>, vector<1x128xf32>
    %74 = vector.broadcast %73 : vector<1x128xf32> to vector<9x128xf32>
    %75 = arith.addf %72, %74 : vector<9x128xf32>
    %cst_88 = arith.constant 0.000000e+00 : f32
    %76 = vector.broadcast %cst_88 : f32 to vector<9x128xf32>
    %77 = arith.maximumf %75, %76 : vector<9x128xf32>
    %c2_89 = arith.constant 2 : index
    %c0_90 = arith.constant 0 : index
    %78 = vector.load %arg12[%c2_89, %c0_90] : memref<16x128xf32, #tpu.memory_space<vmem>>, vector<9x128xf32>
    tpu.vector_store %arg12[%c2_89, %c0_90], %77 {strides = array<i32>} : memref<16x128xf32, #tpu.memory_space<vmem>>, vector<9x128xf32>,
    %c0_91 = arith.constant 0 : index
    %c0_92 = arith.constant 0 : index
    %79 = tpu.strided_load %arg12[%c0_91, %c0_92] {strides = array<i32: 2, 1>} : memref<16x128xf32, #tpu.memory_space<vmem>>, vector<5x128xf32>
    %c1_93 = arith.constant 1 : index
    %c0_94 = arith.constant 0 : index
    %80 = tpu.strided_load %arg12[%c1_93, %c0_94] {strides = array<i32: 2, 1>} : memref<16x128xf32, #tpu.memory_space<vmem>>, vector<5x128xf32>
    %c2_95 = arith.constant 2 : index
    %c0_96 = arith.constant 0 : index
    %81 = tpu.strided_load %arg12[%c2_95, %c0_96] {strides = array<i32: 2, 1>} : memref<16x128xf32, #tpu.memory_space<vmem>>, vector<5x128xf32>
    %c3_97 = arith.constant 3 : index
    %c0_98 = arith.constant 0 : index
    %82 = tpu.strided_load %arg12[%c3_97, %c0_98] {strides = array<i32: 2, 1>} : memref<16x128xf32, #tpu.memory_space<vmem>>, vector<5x128xf32>
    %83 = tpu.concatenate %79, %80, %81, %82 in 1 : vector<5x128xf32>, vector<5x128xf32>, vector<5x128xf32>, vector<5x128xf32> -> vector<5x512xf32>
    %c0_99 = arith.constant 0 : index
    %c0_100 = arith.constant 0 : index
    %84 = vector.load %arg4[%c0_99, %c0_100] : memref<512x128xf32, #tpu.memory_space<vmem>>, vector<512x128xf32>
    %cst_101 = arith.constant dense<0.000000e+00> : vector<5x128xf32>
    %85 = tpu.matmul %83, %84, %cst_101 {dimension_numbers = #tpu.dot_dimension_numbers<[1], [0], [0], [1], [0, 0, 1, 1], [], []>} : vector<5x512xf32>, vector<512x128xf32>, vector<5x128xf32> -> vector<5x128xf32>
    %c0_102 = arith.constant 0 : index
    %c0_103 = arith.constant 0 : index
    %86 = vector.load %arg5[%c0_102, %c0_103] : memref<1x128xf32, #tpu.memory_space<vmem>>, vector<1x128xf32>
    %87 = vector.broadcast %86 : vector<1x128xf32> to vector<5x128xf32>
    %88 = arith.addf %85, %87 : vector<5x128xf32>
    %cst_104 = arith.constant 0.000000e+00 : f32
    %89 = vector.broadcast %cst_104 : f32 to vector<5x128xf32>
    %90 = arith.maximumf %88, %89 : vector<5x128xf32>
    %c0_105 = arith.constant 0 : index
    %c0_106 = arith.constant 0 : index
    %91 = vector.load %arg13[%c0_105, %c0_106] : memref<8x128xf32, #tpu.memory_space<vmem>>, vector<5x128xf32>
    tpu.vector_store %arg13[%c0_105, %c0_106], %90 {strides = array<i32>} : memref<8x128xf32, #tpu.memory_space<vmem>>, vector<5x128xf32>,
    %c1_107 = arith.constant 1 : index
    %c0_108 = arith.constant 0 : index
    %92 = vector.load %arg13[%c1_107, %c0_108] : memref<8x128xf32, #tpu.memory_space<vmem>>, vector<4x128xf32>
    %c0_109 = arith.constant 0 : index
    %c0_110 = arith.constant 0 : index
    %93 = vector.load %arg13[%c0_109, %c0_110] : memref<8x128xf32, #tpu.memory_space<vmem>>, vector<4x128xf32>
    %94 = tpu.concatenate %92, %93 in 1 : vector<4x128xf32>, vector<4x128xf32> -> vector<4x256xf32>
    %c0_111 = arith.constant 0 : index
    %c0_112 = arith.constant 0 : index
    %95 = vector.load %arg6[%c0_111, %c0_112] : memref<256x256xf32, #tpu.memory_space<vmem>>, vector<256x256xf32>
    %cst_113 = arith.constant dense<0.000000e+00> : vector<4x256xf32>
    %96 = tpu.matmul %94, %95, %cst_113 {dimension_numbers = #tpu.dot_dimension_numbers<[1], [0], [0], [1], [0, 0, 1, 1], [], []>} : vector<4x256xf32>, vector<256x256xf32>, vector<4x256xf32> -> vector<4x256xf32>
    %c0_114 = arith.constant 0 : index
    %c0_115 = arith.constant 0 : index
    %97 = vector.load %arg7[%c0_114, %c0_115] : memref<1x256xf32, #tpu.memory_space<vmem>>, vector<1x256xf32>
    %98 = vector.broadcast %97 : vector<1x256xf32> to vector<4x256xf32>
    %99 = arith.addf %96, %98 : vector<4x256xf32>
    %cst_116 = arith.constant 0.000000e+00 : f32
    %100 = vector.broadcast %cst_116 : f32 to vector<4x256xf32>
    %101 = arith.maximumf %99, %100 : vector<4x256xf32>
    %102 = vector.extract_strided_slice %101 {offsets = [0, 0], sizes = [4, 128], strides = [1, 1]} : vector<4x256xf32> to vector<4x128xf32>
    %c0_117 = arith.constant 0 : index
    %c0_118 = arith.constant 0 : index
    %103 = tpu.strided_load %arg14[%c0_117, %c0_118] {strides = array<i32: 2, 1>} : memref<8x128xf32, #tpu.memory_space<vmem>>, vector<4x128xf32>
    tpu.strided_store %arg14[%c0_117, %c0_118], %102 {strides = array<i32: 2, 1>} : memref<8x128xf32, #tpu.memory_space<vmem>>, vector<4x128xf32>
    %104 = vector.extract_strided_slice %101 {offsets = [0, 128], sizes = [4, 128], strides = [1, 1]} : vector<4x256xf32> to vector<4x128xf32>
    %c1_119 = arith.constant 1 : index
    %c0_120 = arith.constant 0 : index
    %105 = tpu.strided_load %arg14[%c1_119, %c0_120] {strides = array<i32: 2, 1>} : memref<8x128xf32, #tpu.memory_space<vmem>>, vector<4x128xf32>
    tpu.strided_store %arg14[%c1_119, %c0_120], %104 {strides = array<i32: 2, 1>} : memref<8x128xf32, #tpu.memory_space<vmem>>, vector<4x128xf32>
    %c1_121 = arith.constant 1 : index
    %c0_122 = arith.constant 0 : index
    %106 = vector.load %arg14[%c1_121, %c0_122] : memref<8x128xf32, #tpu.memory_space<vmem>>, vector<7x128xf32>
    %c0_123 = arith.constant 0 : index
    %c0_124 = arith.constant 0 : index
    %107 = vector.load %arg14[%c0_123, %c0_124] : memref<8x128xf32, #tpu.memory_space<vmem>>, vector<7x128xf32>
    %108 = tpu.concatenate %106, %107 in 1 : vector<7x128xf32>, vector<7x128xf32> -> vector<7x256xf32>
    %c0_125 = arith.constant 0 : index
    %c0_126 = arith.constant 0 : index
    %109 = vector.load %arg8[%c0_125, %c0_126] : memref<256x256xf32, #tpu.memory_space<vmem>>, vector<256x256xf32>
    %cst_127 = arith.constant dense<0.000000e+00> : vector<7x256xf32>
    %110 = tpu.matmul %108, %109, %cst_127 {dimension_numbers = #tpu.dot_dimension_numbers<[1], [0], [0], [1], [0, 0, 1, 1], [], []>} : vector<7x256xf32>, vector<256x256xf32>, vector<7x256xf32> -> vector<7x256xf32>
    %c0_128 = arith.constant 0 : index
    %c0_129 = arith.constant 0 : index
    %111 = vector.load %arg9[%c0_128, %c0_129] : memref<1x256xf32, #tpu.memory_space<vmem>>, vector<1x256xf32>
    %112 = vector.broadcast %111 : vector<1x256xf32> to vector<7x256xf32>
    %113 = arith.addf %110, %112 : vector<7x256xf32>
    %114 = vector.extract_strided_slice %113 {offsets = [0, 0], sizes = [7, 128], strides = [1, 1]} : vector<7x256xf32> to vector<7x128xf32>
    %c0_130 = arith.constant 0 : index
    %c0_131 = arith.constant 0 : index
    %115 = tpu.strided_load %arg15[%c0_130, %c0_131] {strides = array<i32: 2, 1>} : memref<16x128xf32, #tpu.memory_space<vmem>>, vector<7x128xf32>
    tpu.strided_store %arg15[%c0_130, %c0_131], %114 {strides = array<i32: 2, 1>} : memref<16x128xf32, #tpu.memory_space<vmem>>, vector<7x128xf32>
    %116 = vector.extract_strided_slice %113 {offsets = [0, 128], sizes = [7, 128], strides = [1, 1]} : vector<7x256xf32> to vector<7x128xf32>
    %c1_132 = arith.constant 1 : index
    %c0_133 = arith.constant 0 : index
    %117 = tpu.strided_load %arg15[%c1_132, %c0_133] {strides = array<i32: 2, 1>} : memref<16x128xf32, #tpu.memory_space<vmem>>, vector<7x128xf32>
    tpu.strided_store %arg15[%c1_132, %c0_133], %116 {strides = array<i32: 2, 1>} : memref<16x128xf32, #tpu.memory_space<vmem>>, vector<7x128xf32>
    %c0_134 = arith.constant 0 : index
    %c0_135 = arith.constant 0 : index
    %118 = vector.load %arg15[%c0_134, %c0_135] : memref<16x128xf32, #tpu.memory_space<vmem>>, vector<16x128xf32>
    %c1_136 = arith.constant 1 : index
    %c0_137 = arith.constant 0 : index
    %c0_138 = arith.constant 0 : index
    %119 = vector.load %arg10[%c1_136, %c0_137, %c0_138] : memref<2x16x128xf32, #tpu.memory_space<vmem>>, vector<1x16x128xf32>
    %120 = vector.shape_cast %119 : vector<1x16x128xf32> to vector<16x128xf32>
    %121 = vector.shape_cast %118 : vector<16x128xf32> to vector<1x16x128xf32>
    tpu.vector_store %arg10[%c1_136, %c0_137, %c0_138], %121 {strides = array<i32>} : memref<2x16x128xf32, #tpu.memory_space<vmem>>, vector<1x16x128xf32>,
    return
  }
  func.func @transform_0(%arg0: i32) -> (i32, i32, i32) {
    %c0_i32 = arith.constant 0 : i32
    %c0_i32_0 = arith.constant 0 : i32
    %c0_i32_1 = arith.constant 0 : i32
    return %arg0, %c0_i32, %c0_i32_0 : i32, i32, i32
  }
  func.func @transform_1(%arg0: i32) -> (i32, i32) {
    %c0_i32 = arith.constant 0 : i32
    %c0_i32_0 = arith.constant 0 : i32
    %c0_i32_1 = arith.constant 0 : i32
    return %c0_i32, %c0_i32_0 : i32, i32
  }
  func.func @transform_2(%arg0: i32) -> (i32, i32) {
    %c0_i32 = arith.constant 0 : i32
    %c0_i32_0 = arith.constant 0 : i32
    %c0_i32_1 = arith.constant 0 : i32
    return %c0_i32, %c0_i32_0 : i32, i32
  }
  func.func @transform_3(%arg0: i32) -> (i32, i32) {
    %c0_i32 = arith.constant 0 : i32
    %c0_i32_0 = arith.constant 0 : i32
    %c0_i32_1 = arith.constant 0 : i32
    return %c0_i32, %c0_i32_0 : i32, i32
  }
  func.func @transform_4(%arg0: i32) -> (i32, i32) {
    %c0_i32 = arith.constant 0 : i32
    %c0_i32_0 = arith.constant 0 : i32
    %c0_i32_1 = arith.constant 0 : i32
    return %c0_i32, %c0_i32_0 : i32, i32
  }
  func.func @transform_5(%arg0: i32) -> (i32, i32) {
    %c0_i32 = arith.constant 0 : i32
    %c0_i32_0 = arith.constant 0 : i32
    %c0_i32_1 = arith.constant 0 : i32
    return %c0_i32, %c0_i32_0 : i32, i32
  }
  func.func @transform_6(%arg0: i32) -> (i32, i32) {
    %c0_i32 = arith.constant 0 : i32
    %c0_i32_0 = arith.constant 0 : i32
    %c0_i32_1 = arith.constant 0 : i32
    return %c0_i32, %c0_i32_0 : i32, i32
  }
  func.func @transform_7(%arg0: i32) -> (i32, i32) {
    %c0_i32 = arith.constant 0 : i32
    %c0_i32_0 = arith.constant 0 : i32
    %c0_i32_1 = arith.constant 0 : i32
    return %c0_i32, %c0_i32_0 : i32, i32
  }
  func.func @transform_8(%arg0: i32) -> (i32, i32) {
    %c0_i32 = arith.constant 0 : i32
    %c0_i32_0 = arith.constant 0 : i32
    %c0_i32_1 = arith.constant 0 : i32
    return %c0_i32, %c0_i32_0 : i32, i32
  }
  func.func @transform_9(%arg0: i32) -> (i32, i32, i32) {
    %c0_i32 = arith.constant 0 : i32
    %c0_i32_0 = arith.constant 0 : i32
    %c0_i32_1 = arith.constant 0 : i32
    return %arg0, %c0_i32, %c0_i32_0 : i32, i32, i32
  }
}

</mosaic_0001>

<bundles_post_ra>
// kernel: lis2img_forward.1
= control target key start
LH: loop header
LB: loop body
LE: loop exit
PB: predicated region body
PF: predicated region fallthrough
CT: control target
= control target key end

     0   :  { %14 = vsyncpa [#allocation8], 0  ;;  %s1657_s0 = inlined_call_operand.vmem [shape: f32[2,24,128], index: 0, kind: input, shape index: {}]   ;;  %s1658_s1 = inlined_call_operand.hbm [shape: f32[512,128], index: 1, kind: input, shape index: {}]   ;;  %s1659_s2 = inlined_call_operand.vmem [shape: f32[1,128], index: 2, kind: input, shape index: {}]   ;;  %s1660_s3 = inlined_call_operand.hbm [shape: f32[512,128], index: 3, kind: input, shape index: {}]   ;;  %s1661_s4 = inlined_call_operand.vmem [shape: f32[1,128], index: 4, kind: input, shape index: {}]   ;;  %s1662_s5 = inlined_call_operand.hbm [shape: f32[256,256], index: 5, kind: input, shape index: {}]   ;;  %s1663_s6 = inlined_call_operand.vmem [shape: f32[1,256], index: 6, kind: input, shape index: {}]   ;;  %s1664_s7 = inlined_call_operand.hbm [shape: f32[256,256], index: 7, kind: input, shape index: {}]   ;;  %s1665_s8 = inlined_call_operand.vmem [shape: f32[1,256], index: 8, kind: input, shape index: {}]   ;;  %s1666_s9 = inlined_call_operand.vmem [shape: f32[2,16,128], index: 9, kind: output, shape index: {}]  }
   0x1   :  { %15 = vsyncpa [#allocation10], 0 }
   0x2   :  { %16 = vsyncpa [#allocation13], 0  ;;  %s38_s11 = sshll.u32 %s1660_s3, 4  ;;  %s1532_s12 = smov [#allocation9]   ;;  %s39_s11 = int_to_ptr.hbm [resolvable:$true] %s38_s11 }
   0x3   :  { %s40_s13 = sshll.u32 %s1532_s12, 4  ;;  %s23_s16 = sshll.u32 %s1658_s1, 4  ;;  %s41_s13 = int_to_ptr.vmem [resolvable:$true] %s40_s13  ;;  %s24_s16 = int_to_ptr.hbm [resolvable:$true] %s23_s16 }
   0x4   :  { %s1533_s17 = smov 128   ;;  %s1534_s18 = smov 8  }
   0x5   :  { %46 = dma.hbm_to_vmem [thread:$0]  %s39_s11, 8192, %s41_s13, [#allocation10], %s1533_s17, %s1533_s17, %s1534_s18  }
   0x6   :  { %s1535_s19 = smov [#allocation7]   ;;  %s53_s23 = sshll.u32 %s1662_s5, 4  ;;  %s54_s23 = int_to_ptr.hbm [resolvable:$true] %s53_s23 }
   0x7   :  { %s25_s20 = sshll.u32 %s1535_s19, 4  ;;  %s1536_s3 = smov [#allocation11]   ;;  %s26_s20 = int_to_ptr.vmem [resolvable:$true] %s25_s20 }
   0x8   :  { %31 = dma.hbm_to_vmem [thread:$0]  %s24_s16, 8192, %s26_s20, [#allocation8], %s1533_s17, %s1533_s17, %s1534_s18  }
   0x9   :  { %s55_s24 = sshll.u32 %s1536_s3, 4  ;;  %s68_s1 = sshll.u32 %s1664_s7, 4  ;;  %s56_s24 = int_to_ptr.vmem [resolvable:$true] %s55_s24  ;;  %s69_s1 = int_to_ptr.hbm [resolvable:$true] %s68_s1 }
   0xa   :  { %s1537_s27 = smov 256   ;;  %s1538_s28 = smov 16  }
   0xb   :  { %61 = dma.hbm_to_vmem [thread:$0]  %s54_s23, 8192, %s56_s24, [#allocation10], %s1537_s27, %s1537_s27, %s1538_s28  }
   0xc   :  { %s1539_s29 = smov [#allocation12]  }
   0xd   :  { %s70_s30 = sshll.u32 %s1539_s29, 4  ;;  %s71_s30 = int_to_ptr.vmem [resolvable:$true] %s70_s30 }
   0xe   :  { %76 = dma.hbm_to_vmem [thread:$0]  %s69_s1, 8192, %s71_s30, [#allocation13], %s1537_s27, %s1537_s27, %s1538_s28  }
   0xf   :  { %1526 = dma.done.wait [#allocation8], 8192  }
  0x10   :  { %1527 = vsyncadd [#allocation8], 4294959104 }
  0x11   :  { %1528 = dma.done.wait [#allocation10], 16384  }
  0x12   :  { %1529 = vsyncadd [#allocation10], 4294950912 }
  0x13   :  { %1530 = dma.done.wait [#allocation13], 8192  }
  0x14   :  { %1531 = vsyncadd [#allocation13], 4294959104  ;;  %v167_v0 = vld [vmem:[#allocation7 + $0x178] sm:$0xff]  ;;  %v166_v2 = vld [vmem:[#allocation7 + $0x170] sm:$0xff] }
  0x15   :  { %v135_v1 = vld [vmem:[#allocation7 + $0x78] sm:$0xff]  ;;  %234 = vmatpush.msra.mxu2 %v167_v0  ;;  %v134_v4 = vld [vmem:[#allocation7 + $0x70] sm:$0xff]  ;;  %v165_v6 = vld [vmem:[#allocation7 + $0x168] sm:$0xff] }
  0x16   :  { %188 = vmatpush.msra.mxu0 %v135_v1  ;;  %v183_v3 = vld [vmem:[#allocation7 + $0x1f8] sm:$0xff]  ;;  %v182_v7 = vld [vmem:[#allocation7 + $0x1f0] sm:$0xff]  ;;  %v133_v8 = vld [vmem:[#allocation7 + $0x68] sm:$0xff] }
  0x17   :  { %v151_v5 = vld [vmem:[#allocation7 + $0xf8] sm:$0xff]  ;;  %257 = vmatpush.msra.mxu3 %v183_v3  ;;  %235 = vmatpush.msra.mxu2 %v166_v2  ;;  %v150_v9 = vld [vmem:[#allocation7 + $0xf0] sm:$0xff]  ;;  %v181_v10 = vld [vmem:[#allocation7 + $0x1e8] sm:$0xff] }
  0x18   :  { %211 = vmatpush.msra.mxu1 %v151_v5  ;;  %189 = vmatpush.msra.mxu0 %v134_v4  ;;  %v164_v11 = vld [vmem:[#allocation7 + $0x160] sm:$0xff]  ;;  %v149_v13 = vld [vmem:[#allocation7 + $0xe8] sm:$0xff]  ;;  %v163_v16 = vld [vmem:[#allocation7 + $0x158] sm:$0xff] }
  0x19   :  { %258 = vmatpush.msra.mxu3 %v182_v7  ;;  %v132_v12 = vld [vmem:[#allocation7 + $0x60] sm:$0xff]  ;;  %236 = vmatpush.msra.mxu2 %v165_v6  ;;  %v131_v17 = vld [vmem:[#allocation7 + $0x58] sm:$0xff]  ;;  %v162_v20 = vld [vmem:[#allocation7 + $0x150] sm:$0xff] }
  0x1a   :  { %212 = vmatpush.msra.mxu1 %v150_v9  ;;  %190 = vmatpush.msra.mxu0 %v133_v8  ;;  %v180_v14 = vld [vmem:[#allocation7 + $0x1e0] sm:$0xff]  ;;  %v179_v18 = vld [vmem:[#allocation7 + $0x1d8] sm:$0xff]  ;;  %v130_v21 = vld [vmem:[#allocation7 + $0x50] sm:$0xff] }
  0x1b   :  { %v148_v15 = vld [vmem:[#allocation7 + $0xe0] sm:$0xff]  ;;  %259 = vmatpush.msra.mxu3 %v181_v10  ;;  %237 = vmatpush.msra.mxu2 %v164_v11  ;;  %v147_v19 = vld [vmem:[#allocation7 + $0xd8] sm:$0xff]  ;;  %v178_v22 = vld [vmem:[#allocation7 + $0x1d0] sm:$0xff] }
  0x1c   :  { %213 = vmatpush.msra.mxu1 %v149_v13  ;;  %191 = vmatpush.msra.mxu0 %v132_v12  ;;  %v146_v23 = vld [vmem:[#allocation7 + $0xd0] sm:$0xff]  ;;  %v161_v24 = vld [vmem:[#allocation7 + $0x148] sm:$0xff]  ;;  %v160_v28 = vld [vmem:[#allocation7 + $0x140] sm:$0xff] }
  0x1d   :  { %260 = vmatpush.msra.mxu3 %v180_v14  ;;  %238 = vmatpush.msra.mxu2 %v163_v16  ;;  %v129_v25 = vld [vmem:[#allocation7 + $0x48] sm:$0xff]  ;;  %v128_v29 = vld [vmem:[#allocation7 + $0x40] sm:$0xff]  ;;  %v159_v32 = vld [vmem:[#allocation7 + $0x138] sm:$0xff] }
  0x1e   :  { %214 = vmatpush.msra.mxu1 %v148_v15  ;;  %192 = vmatpush.msra.mxu0 %v131_v17  ;;  %v177_v26 = vld [vmem:[#allocation7 + $0x1c8] sm:$0xff]  ;;  %v176_v30 = vld [vmem:[#allocation7 + $0x1c0] sm:$0xff]  ;;  %v127_v33 = vld [vmem:[#allocation7 + $0x38] sm:$0xff] }
  0x1f   :  { %261 = vmatpush.msra.mxu3 %v179_v18  ;;  %239 = vmatpush.msra.mxu2 %v162_v20  ;;  %v145_v27 = vld [vmem:[#allocation7 + $0xc8] sm:$0xff]  ;;  %v144_v31 = vld [vmem:[#allocation7 + $0xc0] sm:$0xff]  ;;  %v175_v34 = vld [vmem:[#allocation7 + $0x1b8] sm:$0xff] }
  0x20   :  { %215 = vmatpush.msra.mxu1 %v147_v19  ;;  %193 = vmatpush.msra.mxu0 %v130_v21  ;;  %v143_v35 = vld [vmem:[#allocation7 + $0xb8] sm:$0xff]  ;;  %v158_v36 = vld [vmem:[#allocation7 + $0x130] sm:$0xff]  ;;  %v157_v40 = vld [vmem:[#allocation7 + $0x128] sm:$0xff] }
  0x21   :  { %262 = vmatpush.msra.mxu3 %v178_v22  ;;  %240 = vmatpush.msra.mxu2 %v161_v24  ;;  %v126_v37 = vld [vmem:[#allocation7 + $0x30] sm:$0xff]  ;;  %v125_v41 = vld [vmem:[#allocation7 + $0x28] sm:$0xff]  ;;  %v156_v42 = vld [vmem:[#allocation7 + $0x120] sm:$0xff] }
  0x22   :  { %216 = vmatpush.msra.mxu1 %v146_v23  ;;  %194 = vmatpush.msra.mxu0 %v129_v25  ;;  %v174_v38 = vld [vmem:[#allocation7 + $0x1b0] sm:$0xff]  ;;  %v173_v43 = vld [vmem:[#allocation7 + $0x1a8] sm:$0xff]  ;;  %v124_v44 = vld [vmem:[#allocation7 + $0x20] sm:$0xff] }
  0x23   :  { %263 = vmatpush.msra.mxu3 %v177_v26  ;;  %241 = vmatpush.msra.mxu2 %v160_v28  ;;  %v142_v39 = vld [vmem:[#allocation7 + $0xb0] sm:$0xff]  ;;  %v141_v45 = vld [vmem:[#allocation7 + $0xa8] sm:$0xff]  ;;  %v99_v46 = vld [vmem:[%s1657_s0] sm:$0xff] }
  0x24   :  { %217 = vmatpush.msra.mxu1 %v145_v27  ;;  %195 = vmatpush.msra.mxu0 %v128_v29  ;;  %v100_v47 = vld [vmem:[%s1657_s0 + $0x8] sm:$0xff]  ;;  %v101_v48 = vld [vmem:[%s1657_s0 + $0x10] sm:$0xff]  ;;  %102 = vst [vmem:[#allocation2] sm:$0xff] %v99_v46  ;;  %v155_v51 = vld [vmem:[#allocation7 + $0x118] sm:$0xff] }
  0x25   :  { %264 = vmatpush.msra.mxu3 %v176_v30  ;;  %242 = vmatpush.msra.mxu2 %v159_v32  ;;  %v172_v49 = vld [vmem:[#allocation7 + $0x1a0] sm:$0xff]  ;;  %v123_v52 = vld [vmem:[#allocation7 + $0x18] sm:$0xff]  ;;  %103 = vst [vmem:[#allocation2 + $0x8] sm:$0xff] %v100_v47  ;;  %v154_v55 = vld [vmem:[#allocation7 + $0x110] sm:$0xff] }
  0x26   :  { %218 = vmatpush.msra.mxu1 %v144_v31  ;;  %196 = vmatpush.msra.mxu0 %v127_v33  ;;  %v140_v50 = vld [vmem:[#allocation7 + $0xa0] sm:$0xff]  ;;  %v171_v53 = vld [vmem:[#allocation7 + $0x198] sm:$0xff]  ;;  %104 = vst [vmem:[#allocation2 + $0x10] sm:$0xff] %v101_v48  ;;  %v122_v56 = vld [vmem:[#allocation7 + $0x10] sm:$0xff] }
  0x27   :  { %265 = vmatpush.msra.mxu3 %v175_v34  ;;  %243 = vmatpush.msra.mxu2 %v158_v36  ;;  %v139_v54 = vld [vmem:[#allocation7 + $0x98] sm:$0xff]  ;;  %v170_v57 = vld [vmem:[#allocation7 + $0x190] sm:$0xff]  ;;  %v153_v59 = vld [vmem:[#allocation7 + $0x108] sm:$0xff] }
  0x28   :  { %219 = vmatpush.msra.mxu1 %v143_v35  ;;  %197 = vmatpush.msra.mxu0 %v126_v37  ;;  %v138_v58 = vld [vmem:[#allocation7 + $0x90] sm:$0xff]  ;;  %v121_v60 = vld [vmem:[#allocation7 + $0x8] sm:$0xff]  ;;  %v152_v61 = vld [vmem:[#allocation7 + $0x100] sm:$0xff] }
  0x29   :  { %266 = vmatpush.msra.mxu3 %v174_v38  ;;  %244 = vmatpush.msra.mxu2 %v157_v40  ;;  %v169_v62 = vld [vmem:[#allocation7 + $0x188] sm:$0xff]  ;;  %v120_v63 = vld [vmem:[#allocation7] sm:$0xff]  ;;  %v1412_v2 = vld [vmem:[%s1657_s0 + $0x18] sm:$0xff] }
  0x2a   :  { %220 = vmatpush.msra.mxu1 %v142_v39  ;;  %198 = vmatpush.msra.mxu0 %v125_v41  ;;  %v137_v0 = vld [vmem:[#allocation7 + $0x88] sm:$0xff]  ;;  %v168_v1 = vld [vmem:[#allocation7 + $0x180] sm:$0xff]  ;;  %v1413_v3 = vld [vmem:[%s1657_s0 + $0x20] sm:$0xff] }
  0x2b   :  { %267 = vmatpush.msra.mxu3 %v173_v43  ;;  %245 = vmatpush.msra.mxu2 %v156_v42  ;;  %v136_v5 = vld [vmem:[#allocation7 + $0x80] sm:$0xff]  ;;  %v306_v7 = vld [vmem:[#allocation9 + $0x78] sm:$0xff]  ;;  %v305_v14 = vld [vmem:[#allocation9 + $0x70] sm:$0xff] }
  0x2c   :  { %221 = vmatpush.msra.mxu1 %v141_v45  ;;  %199 = vmatpush.msra.mxu0 %v124_v44  ;;  %v105_v4 = vld [vmem:[#allocation2] ss:$2 sm:$0xff]  ;;  %v109_v10 = vld [vmem:[#allocation2 + $0x1] ss:$2 sm:$0xff]  ;;  %v321_v18 = vld [vmem:[#allocation9 + $0xf0] sm:$0xff] }
  0x2d   :  { %268 = vmatpush.msra.mxu3 %v172_v49  ;;  %246 = vmatpush.msra.mxu2 %v155_v51  ;;  %v1414_v6 = vld [vmem:[%s1657_s0 + $0x28] sm:$0xff]  ;;  %v115_v11 = vld [vmem:[#allocation2 + $0x12] ss:$2 sm:$0x1]  ;;  %v322_v12 = vld [vmem:[#allocation9 + $0xf8] sm:$0xff]  ;;  %v1540_v49 = vmov 0.0  }
  0x2e   :  { %222 = vmatpush.msra.mxu1 %v140_v50  ;;  %200 = vmatpush.msra.mxu0 %v123_v52  ;;  %v113_v8 = vld [vmem:[#allocation2 + $0x2] ss:$2 sm:$0xff]  ;;  %v117_v9 = vld [vmem:[#allocation2 + $0x3] ss:$2 sm:$0xff]  ;;  %v353_v19 = vld [vmem:[#allocation9 + $0x1f0] sm:$0xff]  ;;  %95 = vst [vmem:[#allocation3] sm:$0xff] %v1540_v49 }
  0x2f   :  { %269 = vmatpush.msra.mxu3 %v171_v53  ;;  %247 = vmatpush.msra.mxu2 %v154_v55  ;;  %761 = vst [vmem:[#allocation2] sm:$0xff] %v1412_v2  ;;  %v354_v13 = vld [vmem:[#allocation9 + $0x1f8] sm:$0xff]  ;;  %v107_v15 = vld [vmem:[#allocation2 + $0x10] ss:$2 sm:$0x1]  ;;  %v337_v23 = vld [vmem:[#allocation9 + $0x170] sm:$0xff] }
  0x30   :  { %223 = vmatpush.msra.mxu1 %v139_v54  ;;  %201 = vmatpush.msra.mxu0 %v122_v56  ;;  %762 = vst [vmem:[#allocation2 + $0x8] sm:$0xff] %v1413_v3  ;;  %v119_v16 = vld [vmem:[#allocation2 + $0x13] ss:$2 sm:$0x1]  ;;  %v338_v20 = vld [vmem:[#allocation9 + $0x178] sm:$0xff]  ;;  %v303_v25 = vld [vmem:[#allocation9 + $0x60] sm:$0xff] }
  0x31   :  { %270 = vmatpush.msra.mxu3 %v170_v57  ;;  %248 = vmatpush.msra.mxu2 %v153_v59  ;;  %v111_v17 = vld [vmem:[#allocation2 + $0x11] ss:$2 sm:$0x1]  ;;  %v319_v26 = vld [vmem:[#allocation9 + $0xe0] sm:$0xff]  ;;  %v302_v28 = vld [vmem:[#allocation9 + $0x58] sm:$0xff]  ;;  %96 = vst [vmem:[#allocation3 + $0x8] sm:$0xff] %v1540_v49 }
  0x32   :  { %224 = vmatpush.msra.mxu1 %v138_v58  ;;  %202 = vmatpush.msra.mxu0 %v121_v60  ;;  %763 = vst [vmem:[#allocation2 + $0x10] sm:$0xff] %v1414_v6  ;;  %v304_v21 = vld [vmem:[#allocation9 + $0x68] sm:$0xff]  ;;  %v351_v27 = vld [vmem:[#allocation9 + $0x1e0] sm:$0xff]  ;;  %v318_v29 = vld [vmem:[#allocation9 + $0xd8] sm:$0xff] }
  0x33   :  { %271 = vmatpush.msra.mxu3 %v169_v62  ;;  %249 = vmatpush.msra.mxu2 %v152_v61  ;;  %v352_v22 = vld [vmem:[#allocation9 + $0x1e8] sm:$0xff]  ;;  %v350_v30 = vld [vmem:[#allocation9 + $0x1d8] sm:$0xff]  ;;  %v301_v31 = vld [vmem:[#allocation9 + $0x50] sm:$0xff]  ;;  %97 = vst [vmem:[#allocation6] sm:$0xff] %v1540_v49 }
  0x34   :  { %225 = vmatpush.msra.mxu1 %v137_v0  ;;  %203 = vmatpush.msra.mxu0 %v120_v63  ;;  %v320_v24 = vld [vmem:[#allocation9 + $0xe8] sm:$0xff]  ;;  %v317_v32 = vld [vmem:[#allocation9 + $0xd0] sm:$0xff]  ;;  %v299_v38 = vld [vmem:[#allocation9 + $0x40] sm:$0xff]  ;;  %98 = vst [vmem:[#allocation6 + $0x8] sm:$0xff] %v1540_v49 }
  0x35   :  { %250 = vmatmul.f32.vlgmr.msra.gmra.mxu2 %v113_v8  ;;  %272 = vmatpush.msra.mxu3 %v168_v1  ;;  %v349_v33 = vld [vmem:[#allocation9 + $0x1d0] sm:$0xff]  ;;  %v300_v34 = vld [vmem:[#allocation9 + $0x48] sm:$0xff]  ;;  %v315_v39 = vld [vmem:[#allocation9 + $0xc0] sm:$0xff] }
  0x36   :  { %204 = vmatmul.f32.vlgmr.msra.gmra.mxu0 %v105_v4  ;;  %273 = vmatmul.f32.vlgmr.msra.gmra.mxu3 %v117_v9  ;;  %v316_v35 = vld [vmem:[#allocation9 + $0xc8] sm:$0xff]  ;;  %v335_v40 = vld [vmem:[#allocation9 + $0x160] sm:$0xff]  ;;  %v298_v42 = vld [vmem:[#allocation9 + $0x38] sm:$0xff] }
  0x37   :  { %226 = vmatpush.msra.mxu1 %v136_v5  ;;  %359 = vmatpush.msrb.mxu0 %v306_v7  ;;  %v336_v36 = vld [vmem:[#allocation9 + $0x168] sm:$0xff]  ;;  %v347_v41 = vld [vmem:[#allocation9 + $0x1c0] sm:$0xff]  ;;  %v314_v43 = vld [vmem:[#allocation9 + $0xb8] sm:$0xff] }
  0x38   :  { %227 = vmatmul.f32.vlgmr.msra.gmra.mxu1 %v109_v10  ;;  %419 = vmatpush.msrb.mxu3 %v354_v13  ;;  %v348_v37 = vld [vmem:[#allocation9 + $0x1c8] sm:$0xff]  ;;  %v334_v44 = vld [vmem:[#allocation9 + $0x158] sm:$0xff]  ;;  %v297_v46 = vld [vmem:[#allocation9 + $0x30] sm:$0xff] }
  0x39   :  { %379 = vmatpush.msrb.mxu1 %v322_v12  ;;  %360 = vmatpush.msrb.mxu0 %v305_v14  ;;  %v346_v45 = vld [vmem:[#allocation9 + $0x1b8] sm:$0xff]  ;;  %v313_v47 = vld [vmem:[#allocation9 + $0xb0] sm:$0xff]  ;;  %v296_v51 = vld [vmem:[#allocation9 + $0x28] sm:$0xff] }
  0x3a   :  { %420 = vmatpush.msrb.mxu3 %v353_v19  ;;  %399 = vmatpush.msrb.mxu2 %v338_v20  ;;  %v333_v48 = vld [vmem:[#allocation9 + $0x150] sm:$0xff]  ;;  %v312_v52 = vld [vmem:[#allocation9 + $0xa8] sm:$0xff]  ;;  %v295_v55 = vld [vmem:[#allocation9 + $0x20] sm:$0xff] }
  0x3b   :  { %380 = vmatpush.msrb.mxu1 %v321_v18  ;;  %361 = vmatpush.msrb.mxu0 %v304_v21  ;;  %v345_v50 = vld [vmem:[#allocation9 + $0x1b0] sm:$0xff]  ;;  %v332_v53 = vld [vmem:[#allocation9 + $0x148] sm:$0xff]  ;;  %v311_v56 = vld [vmem:[#allocation9 + $0xa0] sm:$0xff] }
  0x3c   :  { %421 = vmatpush.msrb.mxu3 %v352_v22  ;;  %400 = vmatpush.msrb.mxu2 %v337_v23  ;;  %v344_v54 = vld [vmem:[#allocation9 + $0x1a8] sm:$0xff]  ;;  %v331_v57 = vld [vmem:[#allocation9 + $0x140] sm:$0xff]  ;;  %v294_v59 = vld [vmem:[#allocation9 + $0x18] sm:$0xff] }
  0x3d   :  { %253 = vmatmul.f32.gmra.mxu2 %v115_v11  ;;  %381 = vmatpush.msrb.mxu1 %v320_v24  ;;  %v343_v58 = vld [vmem:[#allocation9 + $0x1a0] sm:$0xff]  ;;  %v310_v60 = vld [vmem:[#allocation9 + $0x98] sm:$0xff]  ;;  %v293_v63 = vld [vmem:[#allocation9 + $0x10] sm:$0xff] }
  0x3e   :  { %207 = vmatmul.f32.gmra.mxu0 %v107_v15  ;;  %276 = vmatmul.f32.gmra.mxu3 %v119_v16  ;;  %v330_v61 = vld [vmem:[#allocation9 + $0x138] sm:$0xff]  ;;  %v309_v0 = vld [vmem:[#allocation9 + $0x90] sm:$0xff]  ;;  %v292_v3 = vld [vmem:[#allocation9 + $0x8] sm:$0xff] }
  0x3f   :  { %362 = vmatpush.msrb.mxu0 %v303_v25  ;;  %382 = vmatpush.msrb.mxu1 %v319_v26  ;;  %v342_v62 = vld [vmem:[#allocation9 + $0x198] sm:$0xff]  ;;  %v329_v1 = vld [vmem:[#allocation9 + $0x130] sm:$0xff]  ;;  %v308_v4 = vld [vmem:[#allocation9 + $0x88] sm:$0xff] }
  0x40   :  { %230 = vmatmul.f32.gmra.mxu1 %v111_v17  ;;  %422 = vmatpush.msrb.mxu3 %v351_v27  ;;  %v341_v2 = vld [vmem:[#allocation9 + $0x190] sm:$0xff]  ;;  %v328_v5 = vld [vmem:[#allocation9 + $0x128] sm:$0xff]  ;;  %v291_v7 = vld [vmem:[#allocation9] sm:$0xff] }
  0x41   :  { %363 = vmatpush.msrb.mxu0 %v302_v28  ;;  %383 = vmatpush.msrb.mxu1 %v318_v29  ;;  %v340_v6 = vld [vmem:[#allocation9 + $0x188] sm:$0xff]  ;;  %v307_v8 = vld [vmem:[#allocation9 + $0x80] sm:$0xff]  ;;  %v326_v11 = vld [vmem:[#allocation9 + $0x118] sm:$0xff] }
  0x42   :  { %423 = vmatpush.msrb.mxu3 %v350_v30  ;;  %401 = vmatpush.msrb.mxu2 %v336_v36  ;;  %v327_v9 = vld [vmem:[#allocation9 + $0x120] sm:$0xff]  ;;  %v325_v12 = vld [vmem:[#allocation9 + $0x110] sm:$0xff]  ;;  %v324_v13 = vld [vmem:[#allocation9 + $0x108] sm:$0xff] }
  0x43   :  { %364 = vmatpush.msrb.mxu0 %v301_v31  ;;  %384 = vmatpush.msrb.mxu1 %v317_v32  ;;  %v339_v10 = vld [vmem:[#allocation9 + $0x180] sm:$0xff]  ;;  %v473_v15 = vld [vmem:[#allocation11 + $0xf0] sm:$0xff]  ;;  %v474_v17 = vld [vmem:[#allocation11 + $0xf8] sm:$0xff] }
  0x44   :  { %424 = vmatpush.msrb.mxu3 %v349_v33  ;;  %402 = vmatpush.msrb.mxu2 %v335_v40  ;;  %v323_v14 = vld [vmem:[#allocation9 + $0x100] sm:$0xff]  ;;  %v505_v16 = vld [vmem:[#allocation11 + $0x1f0] sm:$0xff]  ;;  %v1426_v18 = vld [vmem:[%s1659_s2] ss:$0 sm:$0xff] }
  0x45   :  { %365 = vmatpush.msrb.mxu0 %v300_v34  ;;  %385 = vmatpush.msrb.mxu1 %v316_v35  ;;  %v506_v19 = vld [vmem:[#allocation11 + $0x1f8] sm:$0xff] }
  0x46   :  { %425 = vmatpush.msrb.mxu3 %v348_v37  ;;  %403 = vmatpush.msrb.mxu2 %v334_v44  ;;  %v472_v44 = vld [vmem:[#allocation11 + $0xe8] sm:$0xff]  ;;  %v502_v49 = vld [vmem:[#allocation11 + $0x1d8] sm:$0xff] }
  0x47   :  { %366 = vmatpush.msrb.mxu0 %v299_v38  ;;  %386 = vmatpush.msrb.mxu1 %v315_v39 }
  0x48   :  { %426 = vmatpush.msrb.mxu3 %v347_v41  ;;  %404 = vmatpush.msrb.mxu2 %v333_v48  ;;  %v470_v48 = vld [vmem:[#allocation11 + $0xd8] sm:$0xff] }
  0x49   :  { %367 = vmatpush.msrb.mxu0 %v298_v42  ;;  %387 = vmatpush.msrb.mxu1 %v314_v43  ;;  %v471_v42 = vld [vmem:[#allocation11 + $0xe0] sm:$0xff] }
  0x4a   :  { %427 = vmatpush.msrb.mxu3 %v346_v45  ;;  %405 = vmatpush.msrb.mxu2 %v332_v53  ;;  %v503_v43 = vld [vmem:[#allocation11 + $0x1e0] sm:$0xff]  ;;  %v504_v45 = vld [vmem:[#allocation11 + $0x1e8] sm:$0xff] }
  0x4b   :  { %368 = vmatpush.msrb.mxu0 %v297_v46  ;;  %388 = vmatpush.msrb.mxu1 %v313_v47  ;;  %v469_v46 = vld [vmem:[#allocation11 + $0xd0] sm:$0xff]  ;;  %v500_v53 = vld [vmem:[#allocation11 + $0x1c8] sm:$0xff] }
  0x4c   :  { %428 = vmatpush.msrb.mxu3 %v345_v50  ;;  %406 = vmatpush.msrb.mxu2 %v331_v57  ;;  %v501_v47 = vld [vmem:[#allocation11 + $0x1d0] sm:$0xff]  ;;  %v467_v50 = vld [vmem:[#allocation11 + $0xc0] sm:$0xff]  ;;  %v498_v57 = vld [vmem:[#allocation11 + $0x1b8] sm:$0xff] }
  0x4d   :  { %369 = vmatpush.msrb.mxu0 %v296_v51  ;;  %389 = vmatpush.msrb.mxu1 %v312_v52  ;;  %v499_v51 = vld [vmem:[#allocation11 + $0x1c0] sm:$0xff]  ;;  %v468_v52 = vld [vmem:[#allocation11 + $0xc8] sm:$0xff] }
  0x4e   :  { %429 = vmatpush.msrb.mxu3 %v344_v54  ;;  %407 = vmatpush.msrb.mxu2 %v330_v61  ;;  %v465_v54 = vld [vmem:[#allocation11 + $0xb0] sm:$0xff]  ;;  %v496_v61 = vld [vmem:[#allocation11 + $0x1a8] sm:$0xff] }
  0x4f   :  { %370 = vmatpush.msrb.mxu0 %v295_v55  ;;  %390 = vmatpush.msrb.mxu1 %v311_v56  ;;  %v497_v55 = vld [vmem:[#allocation11 + $0x1b0] sm:$0xff]  ;;  %v466_v56 = vld [vmem:[#allocation11 + $0xb8] sm:$0xff] }
  0x50   :  { %430 = vmatpush.msrb.mxu3 %v343_v58  ;;  %408 = vmatpush.msrb.mxu2 %v329_v1  ;;  %v463_v58 = vld [vmem:[#allocation11 + $0xa0] sm:$0xff]  ;;  %v494_v1 = vld [vmem:[#allocation11 + $0x198] sm:$0xff] }
  0x51   :  { %371 = vmatpush.msrb.mxu0 %v294_v59  ;;  %391 = vmatpush.msrb.mxu1 %v310_v60  ;;  %v495_v59 = vld [vmem:[#allocation11 + $0x1a0] sm:$0xff]  ;;  %v464_v60 = vld [vmem:[#allocation11 + $0xa8] sm:$0xff] }
  0x52   :  { %431 = vmatpush.msrb.mxu3 %v342_v62  ;;  %409 = vmatpush.msrb.mxu2 %v328_v5  ;;  %v461_v62 = vld [vmem:[#allocation11 + $0x90] sm:$0xff]  ;;  %v492_v5 = vld [vmem:[#allocation11 + $0x188] sm:$0xff] }
  0x53   :  { %372 = vmatpush.msrb.mxu0 %v293_v63  ;;  %392 = vmatpush.msrb.mxu1 %v309_v0  ;;  %v493_v63 = vld [vmem:[#allocation11 + $0x190] sm:$0xff]  ;;  %v462_v0 = vld [vmem:[#allocation11 + $0x98] sm:$0xff] }
  0x54   :  { %432 = vmatpush.msrb.mxu3 %v341_v2  ;;  %410 = vmatpush.msrb.mxu2 %v327_v9  ;;  %v459_v2 = vld [vmem:[#allocation11 + $0x80] sm:$0xff]  ;;  %v490_v9 = vld [vmem:[#allocation11 + $0x178] sm:$0xff] }
  0x55   :  { %373 = vmatpush.msrb.mxu0 %v292_v3  ;;  %393 = vmatpush.msrb.mxu1 %v308_v4  ;;  %v491_v3 = vld [vmem:[#allocation11 + $0x180] sm:$0xff]  ;;  %v460_v4 = vld [vmem:[#allocation11 + $0x88] sm:$0xff] }
  0x56   :  { %433 = vmatpush.msrb.mxu3 %v340_v6  ;;  %411 = vmatpush.msrb.mxu2 %v326_v11  ;;  %v457_v6 = vld [vmem:[#allocation11 + $0x70] sm:$0xff]  ;;  %v487_v11 = vld [vmem:[#allocation11 + $0x160] sm:$0xff] }
  0x57   :  { %374 = vmatpush.msrb.mxu0 %v291_v7  ;;  %394 = vmatpush.msrb.mxu1 %v307_v8  ;;  %v489_v7 = vld [vmem:[#allocation11 + $0x170] sm:$0xff]  ;;  %v458_v8 = vld [vmem:[#allocation11 + $0x78] sm:$0xff] }
  0x58   :  { %434 = vmatpush.msrb.mxu3 %v339_v10  ;;  %412 = vmatpush.msrb.mxu2 %v325_v12  ;;  %v455_v10 = vld [vmem:[#allocation11 + $0x60] sm:$0xff]  ;;  %v456_v12 = vld [vmem:[#allocation11 + $0x68] sm:$0xff] }
  0x59   :  { %513 = vmatpush.msra.mxu0 %v473_v15  ;;  %533 = vmatpush.msra.mxu1 %v505_v16  ;;  %v485_v15 = vld [vmem:[#allocation11 + $0x150] sm:$0xff]  ;;  %v454_v16 = vld [vmem:[#allocation11 + $0x58] sm:$0xff] }
  0x5a   :  { %413 = vmatpush.msrb.mxu2 %v324_v13  ;;  %573 = vmatpush.msra.mxu3 %v506_v19  ;;  %v488_v13 = vld [vmem:[#allocation11 + $0x168] sm:$0xff]  ;;  %v483_v19 = vld [vmem:[#allocation11 + $0x140] sm:$0xff] }
  0x5b   :  { %514 = vmatpush.msra.mxu0 %v471_v42  ;;  %534 = vmatpush.msra.mxu1 %v503_v43  ;;  %v628_v42 = vld [vmem:[#allocation12 + $0xe0] sm:$0xff]  ;;  %v662_v43 = vld [vmem:[#allocation12 + $0x1f0] sm:$0xff] }
  0x5c   :  { %414 = vmatpush.msrb.mxu2 %v323_v14  ;;  %574 = vmatpush.msra.mxu3 %v504_v45  ;;  %v453_v14 = vld [vmem:[#allocation11 + $0x50] sm:$0xff]  ;;  %v661_v45 = vld [vmem:[#allocation12 + $0x1e8] sm:$0xff] }
  0x5d   :  { %515 = vmatpush.msra.mxu0 %v469_v46  ;;  %535 = vmatpush.msra.mxu1 %v501_v47  ;;  %v626_v46 = vld [vmem:[#allocation12 + $0xd0] sm:$0xff]  ;;  %v660_v47 = vld [vmem:[#allocation12 + $0x1e0] sm:$0xff] }
  0x5e   :  { %553 = vmatpush.msra.mxu2 %v474_v17  ;;  %575 = vmatpush.msra.mxu3 %v502_v49  ;;  %v486_v17 = vld [vmem:[#allocation11 + $0x158] sm:$0xff]  ;;  %v625_v49 = vld [vmem:[#allocation12 + $0xc8] sm:$0xff] }
  0x5f   :  { %516 = vmatpush.msra.mxu0 %v467_v50  ;;  %536 = vmatpush.msra.mxu1 %v499_v51  ;;  %v624_v50 = vld [vmem:[#allocation12 + $0xc0] sm:$0xff]  ;;  %v658_v51 = vld [vmem:[#allocation12 + $0x1d0] sm:$0xff] }
  0x60   :  { %554 = vmatpush.msra.mxu2 %v472_v44  ;;  %576 = vmatpush.msra.mxu3 %v500_v53  ;;  %v627_v44 = vld [vmem:[#allocation12 + $0xd8] sm:$0xff]  ;;  %v656_v53 = vld [vmem:[#allocation12 + $0x1c0] sm:$0xff] }
  0x61   :  { %517 = vmatpush.msra.mxu0 %v465_v54  ;;  %537 = vmatpush.msra.mxu1 %v497_v55  ;;  %v623_v54 = vld [vmem:[#allocation12 + $0xb8] sm:$0xff]  ;;  %v622_v55 = vld [vmem:[#allocation12 + $0xb0] sm:$0xff] }
  0x62   :  { %555 = vmatpush.msra.mxu2 %v470_v48  ;;  %577 = vmatpush.msra.mxu3 %v498_v57  ;;  %v659_v48 = vld [vmem:[#allocation12 + $0x1d8] sm:$0xff] }
  0x63   :  { %518 = vmatpush.msra.mxu0 %v463_v58  ;;  %538 = vmatpush.msra.mxu1 %v495_v59  ;;  %v655_v57 = vld [vmem:[#allocation12 + $0x1b8] sm:$0xff]  ;;  %v654_v58 = vld [vmem:[#allocation12 + $0x1b0] sm:$0xff] }
  0x64   :  { %556 = vmatpush.msra.mxu2 %v468_v52  ;;  %578 = vmatpush.msra.mxu3 %v496_v61  ;;  %v657_v52 = vld [vmem:[#allocation12 + $0x1c8] sm:$0xff]  ;;  %v620_v61 = vld [vmem:[#allocation12 + $0xa0] sm:$0xff] }
  0x65   :  { %519 = vmatpush.msra.mxu0 %v461_v62  ;;  %539 = vmatpush.msra.mxu1 %v493_v63  ;;  %v653_v62 = vld [vmem:[#allocation12 + $0x1a8] sm:$0xff]  ;;  %v652_v63 = vld [vmem:[#allocation12 + $0x1a0] sm:$0xff] }
  0x66   :  { %557 = vmatpush.msra.mxu2 %v466_v56  ;;  %579 = vmatpush.msra.mxu3 %v494_v1  ;;  %v1427_v56 = vld [vmem:[%s1661_s4] ss:$0 sm:$0xff]  ;;  %v618_v1 = vld [vmem:[#allocation12 + $0x90] sm:$0xff] }
  0x67   :  { %520 = vmatpush.msra.mxu0 %v459_v2  ;;  %540 = vmatpush.msra.mxu1 %v491_v3  ;;  %v651_v3 = vld [vmem:[#allocation12 + $0x198] sm:$0xff] }
  0x68   :  { %558 = vmatpush.msra.mxu2 %v464_v60  ;;  %580 = vmatpush.msra.mxu3 %v492_v5  ;;  %v621_v60 = vld [vmem:[#allocation12 + $0xa8] sm:$0xff] }
  0x69   :  { %521 = vmatpush.msra.mxu0 %v457_v6  ;;  %541 = vmatpush.msra.mxu1 %v489_v7  ;;  %v617_v5 = vld [vmem:[#allocation12 + $0x88] sm:$0xff]  ;;  %v616_v6 = vld [vmem:[#allocation12 + $0x80] sm:$0xff] }
  0x6a   :  { %559 = vmatpush.msra.mxu2 %v462_v0  ;;  %581 = vmatpush.msra.mxu3 %v490_v9  ;;  %v619_v0 = vld [vmem:[#allocation12 + $0x98] sm:$0xff]  ;;  %v649_v7 = vld [vmem:[#allocation12 + $0x188] sm:$0xff] }
  0x6b   :  { %522 = vmatpush.msra.mxu0 %v455_v10  ;;  %542 = vmatpush.msra.mxu1 %v487_v11  ;;  %v615_v10 = vld [vmem:[#allocation12 + $0x78] sm:$0xff]  ;;  %v614_v11 = vld [vmem:[#allocation12 + $0x70] sm:$0xff] }
  0x6c   :  { %560 = vmatpush.msra.mxu2 %v460_v4  ;;  %582 = vmatpush.msra.mxu3 %v488_v13  ;;  %v650_v4 = vld [vmem:[#allocation12 + $0x190] sm:$0xff]  ;;  %v647_v13 = vld [vmem:[#allocation12 + $0x178] sm:$0xff] }
  0x6d   :  { %523 = vmatpush.msra.mxu0 %v453_v14  ;;  %543 = vmatpush.msra.mxu1 %v485_v15  ;;  %v646_v14 = vld [vmem:[#allocation12 + $0x170] sm:$0xff] }
  0x6e   :  { %561 = vmatpush.msra.mxu2 %v458_v8  ;;  %583 = vmatpush.msra.mxu3 %v486_v17  ;;  %v648_v8 = vld [vmem:[#allocation12 + $0x180] sm:$0xff] }
  0x6f   :  { %544 = vmatpush.msra.mxu1 %v483_v19  ;;  %v612_v17 = vld [vmem:[#allocation12 + $0x60] sm:$0xff]  ;;  %v645_v19 = vld [vmem:[#allocation12 + $0x168] sm:$0xff] }
  0x70   :  { %562 = vmatpush.msra.mxu2 %v456_v12 }
  0x72   :  { %563 = vmatpush.msra.mxu2 %v454_v16  ;;  %v613_v16 = vld [vmem:[#allocation12 + $0x68] sm:$0xff] }
  0xb3   :  { %v205_v20 = vpop.f32.mrf.mxu0 }
  0xb4   :  { %v206_v21 = vadd.f32 %v1426_v18, %v205_v20  ;;  %v452_v20 = vld [vmem:[#allocation11 + $0x48] sm:$0xff] }
  0xb5   :  { %v228_v22 = vpop.f32.mrf.mxu1  ;;  %564 = vmatpush.msra.mxu2 %v452_v20  ;;  %v644_v20 = vld [vmem:[#allocation12 + $0x160] sm:$0xff] }
  0xb6   :  { %v229_v23 = vadd.f32 %v228_v22, %v206_v21  ;;  %v484_v21 = vld [vmem:[#allocation11 + $0x148] sm:$0xff]  ;;  %v449_v22 = vld [vmem:[#allocation11 + $0x30] sm:$0xff] }
  0xb7   :  { %584 = vmatpush.msra.mxu3 %v484_v21 }
  0xb8   :  { %v251_v24 = vpop.f32.mrf.mxu2 }
  0xb9   :  { %v252_v25 = vadd.f32 %v251_v24, %v229_v23  ;;  %v274_v26 = vpop.f32.mrf.mxu3  ;;  %v481_v23 = vld [vmem:[#allocation11 + $0x130] sm:$0xff]  ;;  %v450_v24 = vld [vmem:[#allocation11 + $0x38] sm:$0xff] }
  0xba   :  { %545 = vmatpush.msra.mxu1 %v481_v23  ;;  %565 = vmatpush.msra.mxu2 %v450_v24  ;;  %v610_v23 = vld [vmem:[#allocation12 + $0x50] sm:$0xff] }
  0xbb   :  { %v275_v27 = vadd.f32 %v274_v26, %v252_v25  ;;  %v208_v28 = vpop.f32.mrf.mxu0  ;;  %v482_v25 = vld [vmem:[#allocation11 + $0x138] sm:$0xff]  ;;  %v447_v26 = vld [vmem:[#allocation11 + $0x20] sm:$0xff] }
  0xbc   :  { %v209_v29 = vadd.f32 %v1426_v18, %v208_v28  ;;  %v451_v18 = vld [vmem:[#allocation11 + $0x40] sm:$0xff]  ;;  %v448_v28 = vld [vmem:[#allocation11 + $0x28] sm:$0xff]  ;;  %585 = vmatpush.msra.mxu3 %v482_v25  ;;  %v643_v25 = vld [vmem:[#allocation12 + $0x158] sm:$0xff] }
  0xbd   :  { %v280_v30 = vmax.f32 %v275_v27, 0.0  ;;  %v231_v31 = vpop.f32.mrf.mxu1  ;;  %524 = vmatpush.msra.mxu0 %v451_v18  ;;  %v479_v27 = vld [vmem:[#allocation11 + $0x120] sm:$0xff]  ;;  %566 = vmatpush.msra.mxu2 %v448_v28 }
  0xbe   :  { %v232_v32 = vadd.f32 %v231_v31, %v209_v29  ;;  %v480_v29 = vld [vmem:[#allocation11 + $0x128] sm:$0xff]  ;;  %v477_v31 = vld [vmem:[#allocation11 + $0x110] sm:$0xff]  ;;  %546 = vmatpush.msra.mxu1 %v479_v27  ;;  %v608_v28 = vld [vmem:[#allocation12 + $0x40] sm:$0xff] }
  0xbf   :  { %282 = vst [vmem:[#allocation3 + $0x2] sm:$0xff] %v280_v30  ;;  %525 = vmatpush.msra.mxu0 %v449_v22  ;;  %v445_v30 = vld [vmem:[#allocation11 + $0x10] sm:$0xff]  ;;  %586 = vmatpush.msra.mxu3 %v480_v29  ;;  %v611_v22 = vld [vmem:[#allocation12 + $0x58] sm:$0xff]  ;;  %v609_v27 = vld [vmem:[#allocation12 + $0x48] sm:$0xff] }
  0xc0   :  { %v254_v33 = vpop.f32.mrf.mxu2  ;;  %547 = vmatpush.msra.mxu1 %v477_v31  ;;  %v640_v31 = vld [vmem:[#allocation12 + $0x140] sm:$0xff] }
  0xc1   :  { %v255_v34 = vadd.f32 %v254_v33, %v232_v32  ;;  %v277_v35 = vpop.f32.mrf.mxu3  ;;  %526 = vmatpush.msra.mxu0 %v447_v26  ;;  %v446_v32 = vld [vmem:[#allocation11 + $0x18] sm:$0xff]  ;;  %v642_v26 = vld [vmem:[#allocation12 + $0x150] sm:$0xff] }
  0xc2   :  { %v478_v33 = vld [vmem:[#allocation11 + $0x118] sm:$0xff]  ;;  %567 = vmatpush.msra.mxu2 %v446_v32 }
  0xc3   :  { %v278_v36 = vadd.f32 %v277_v35, %v255_v34  ;;  %v443_v34 = vld [vmem:[#allocation11] sm:$0xff]  ;;  %527 = vmatpush.msra.mxu0 %v445_v30  ;;  %587 = vmatpush.msra.mxu3 %v478_v33  ;;  %v641_v30 = vld [vmem:[#allocation12 + $0x148] sm:$0xff]  ;;  %v607_v32 = vld [vmem:[#allocation12 + $0x38] sm:$0xff] }
  0xc4   :  { %v475_v35 = vld [vmem:[#allocation11 + $0x100] sm:$0xff]  ;;  %v606_v33 = vld [vmem:[#allocation12 + $0x30] sm:$0xff] }
  0xc5   :  { %v281_v37 = vmax.f32 %v278_v36, 0.0  ;;  %v444_v36 = vld [vmem:[#allocation11 + $0x8] sm:$0xff]  ;;  %528 = vmatpush.msra.mxu0 %v443_v34  ;;  %548 = vmatpush.msra.mxu1 %v475_v35  ;;  %v639_v34 = vld [vmem:[#allocation12 + $0x138] sm:$0xff]  ;;  %v638_v35 = vld [vmem:[#allocation12 + $0x130] sm:$0xff] }
  0xc6   :  { %v284_v38 = vld [vmem:[#allocation3] ss:$2 sm:$0x1f]  ;;  %v286_v39 = vld [vmem:[#allocation3 + $0x1] ss:$2 sm:$0x1f]  ;;  %568 = vmatpush.msra.mxu2 %v444_v36 }
  0xc7   :  { %283 = vst [vmem:[#allocation3 + $0xa] sm:$0x1] %v281_v37  ;;  %375 = vmatmul.f32.vlgmr.msrb.gmra.mxu0 %v284_v38  ;;  %395 = vmatmul.f32.vlgmr.msrb.gmra.mxu1 %v286_v39  ;;  %v290_v40 = vld [vmem:[#allocation3 + $0x3] ss:$2 sm:$0x1f]  ;;  %v476_v37 = vld [vmem:[#allocation11 + $0x108] sm:$0xff] }
  0xc8   :  { %435 = vmatmul.f32.vlgmr.msrb.gmra.mxu3 %v290_v40  ;;  %v631_v38 = vld [vmem:[#allocation12 + $0xf8] sm:$0xff]  ;;  %v630_v39 = vld [vmem:[#allocation12 + $0xf0] sm:$0xff]  ;;  %v629_v40 = vld [vmem:[#allocation12 + $0xe8] sm:$0xff]  ;;  %690 = vmatpush.msrb.mxu1 %v662_v43 }
  0xc9   :  { %588 = vmatpush.msra.mxu3 %v476_v37  ;;  %670 = vmatpush.msrb.mxu0 %v630_v39  ;;  %v605_v36 = vld [vmem:[#allocation12 + $0x28] sm:$0xff]  ;;  %v604_v37 = vld [vmem:[#allocation12 + $0x20] sm:$0xff]  ;;  %v634_v43 = vld [vmem:[#allocation12 + $0x110] sm:$0xff] }
  0xca   :  { %691 = vmatpush.msrb.mxu1 %v660_v47  ;;  %v636_v39 = vld [vmem:[#allocation12 + $0x120] sm:$0xff] }
  0xcb   :  { %671 = vmatpush.msrb.mxu0 %v628_v42  ;;  %v635_v42 = vld [vmem:[#allocation12 + $0x118] sm:$0xff]  ;;  %v600_v47 = vld [vmem:[#allocation12] sm:$0xff] }
  0xcc   :  { %692 = vmatpush.msrb.mxu1 %v658_v51  ;;  %v818_v51 = vld [vmem:[#allocation7 + $0x170] sm:$0xff] }
  0xcd   :  { %672 = vmatpush.msrb.mxu0 %v626_v46 }
  0xce   :  { %v288_v41 = vld [vmem:[#allocation3 + $0x2] ss:$2 sm:$0x1f]  ;;  %693 = vmatpush.msrb.mxu1 %v656_v53  ;;  %v632_v53 = vld [vmem:[#allocation12 + $0x100] sm:$0xff] }
  0xcf   :  { %415 = vmatmul.f32.vlgmr.msrb.gmra.mxu2 %v288_v41  ;;  %v663_v41 = vld [vmem:[#allocation12 + $0x1f8] sm:$0xff]  ;;  %673 = vmatpush.msrb.mxu0 %v624_v50 }
  0xd0   :  { %710 = vmatpush.msrb.mxu2 %v631_v38  ;;  %730 = vmatpush.msrb.mxu3 %v663_v41  ;;  %v637_v38 = vld [vmem:[#allocation12 + $0x128] sm:$0xff]  ;;  %v602_v41 = vld [vmem:[#allocation12 + $0x10] sm:$0xff]  ;;  %v787_v50 = vld [vmem:[#allocation7 + $0x78] sm:$0xff] }
  0xd1   :  { %674 = vmatpush.msrb.mxu0 %v622_v55  ;;  %694 = vmatpush.msrb.mxu1 %v654_v58  ;;  %v803_v55 = vld [vmem:[#allocation7 + $0xf8] sm:$0xff]  ;;  %v785_v58 = vld [vmem:[#allocation7 + $0x68] sm:$0xff] }
  0xd2   :  { %711 = vmatpush.msrb.mxu2 %v629_v40  ;;  %731 = vmatpush.msrb.mxu3 %v661_v45  ;;  %v603_v40 = vld [vmem:[#allocation12 + $0x18] sm:$0xff] }
  0xd3   :  { %675 = vmatpush.msrb.mxu0 %v620_v61  ;;  %695 = vmatpush.msrb.mxu1 %v652_v63  ;;  %v833_v61 = vld [vmem:[#allocation7 + $0x1e8] sm:$0xff] }
  0xd4   :  { %712 = vmatpush.msrb.mxu2 %v627_v44  ;;  %732 = vmatpush.msrb.mxu3 %v659_v48  ;;  %v601_v44 = vld [vmem:[#allocation12 + $0x8] sm:$0xff]  ;;  %v819_v48 = vld [vmem:[#allocation7 + $0x178] sm:$0xff] }
  0xd5   :  { %676 = vmatpush.msrb.mxu0 %v618_v1  ;;  %696 = vmatpush.msrb.mxu1 %v650_v4  ;;  %v801_v63 = vld [vmem:[#allocation7 + $0xe8] sm:$0xff]  ;;  %v832_v1 = vld [vmem:[#allocation7 + $0x1e0] sm:$0xff]  ;;  %v814_v4 = vld [vmem:[#allocation7 + $0x150] sm:$0xff] }
  0xd6   :  { %713 = vmatpush.msrb.mxu2 %v625_v49  ;;  %733 = vmatpush.msrb.mxu3 %v657_v52  ;;  %v633_v49 = vld [vmem:[#allocation12 + $0x108] sm:$0xff]  ;;  %v835_v52 = vld [vmem:[#allocation7 + $0x1f8] sm:$0xff] }
  0xd7   :  { %677 = vmatpush.msrb.mxu0 %v616_v6  ;;  %697 = vmatpush.msrb.mxu1 %v648_v8  ;;  %v782_v6 = vld [vmem:[#allocation7 + $0x50] sm:$0xff]  ;;  %v813_v8 = vld [vmem:[#allocation7 + $0x148] sm:$0xff] }
  0xd8   :  { %714 = vmatpush.msrb.mxu2 %v623_v54  ;;  %734 = vmatpush.msrb.mxu3 %v655_v57  ;;  %v786_v54 = vld [vmem:[#allocation7 + $0x70] sm:$0xff] }
  0xd9   :  { %678 = vmatpush.msrb.mxu0 %v614_v11  ;;  %698 = vmatpush.msrb.mxu1 %v646_v14  ;;  %v834_v57 = vld [vmem:[#allocation7 + $0x1f0] sm:$0xff]  ;;  %v780_v14 = vld [vmem:[#allocation7 + $0x40] sm:$0xff] }
  0xda   :  { %715 = vmatpush.msrb.mxu2 %v621_v60  ;;  %735 = vmatpush.msrb.mxu3 %v653_v62  ;;  %v816_v60 = vld [vmem:[#allocation7 + $0x160] sm:$0xff]  ;;  %v798_v11 = vld [vmem:[#allocation7 + $0xd0] sm:$0xff] }
  0xdb   :  { %679 = vmatpush.msrb.mxu0 %v612_v17  ;;  %699 = vmatpush.msrb.mxu1 %v644_v20  ;;  %v784_v62 = vld [vmem:[#allocation7 + $0x60] sm:$0xff]  ;;  %v810_v20 = vld [vmem:[#allocation7 + $0x130] sm:$0xff] }
  0xdc   :  { %716 = vmatpush.msrb.mxu2 %v619_v0  ;;  %736 = vmatpush.msrb.mxu3 %v651_v3  ;;  %v815_v0 = vld [vmem:[#allocation7 + $0x158] sm:$0xff]  ;;  %v800_v3 = vld [vmem:[#allocation7 + $0xe0] sm:$0xff] }
  0xdd   :  { %680 = vmatpush.msrb.mxu0 %v610_v23  ;;  %700 = vmatpush.msrb.mxu1 %v642_v26  ;;  %v828_v17 = vld [vmem:[#allocation7 + $0x1c0] sm:$0xff]  ;;  %v795_v23 = vld [vmem:[#allocation7 + $0xb8] sm:$0xff]  ;;  %v777_v26 = vld [vmem:[#allocation7 + $0x28] sm:$0xff] }
  0xde   :  { %717 = vmatpush.msrb.mxu2 %v617_v5  ;;  %737 = vmatpush.msrb.mxu3 %v649_v7  ;;  %v831_v5 = vld [vmem:[#allocation7 + $0x1d8] sm:$0xff] }
  0xdf   :  { %681 = vmatpush.msrb.mxu0 %v608_v28  ;;  %701 = vmatpush.msrb.mxu1 %v640_v31  ;;  %v799_v7 = vld [vmem:[#allocation7 + $0xd8] sm:$0xff]  ;;  %v808_v28 = vld [vmem:[#allocation7 + $0x120] sm:$0xff]  ;;  %v793_v31 = vld [vmem:[#allocation7 + $0xa8] sm:$0xff] }
  0xe0   :  { %718 = vmatpush.msrb.mxu2 %v615_v10  ;;  %738 = vmatpush.msrb.mxu3 %v647_v13  ;;  %v781_v10 = vld [vmem:[#allocation7 + $0x48] sm:$0xff] }
  0xe1   :  { %682 = vmatpush.msrb.mxu0 %v606_v33  ;;  %702 = vmatpush.msrb.mxu1 %v638_v35  ;;  %v829_v13 = vld [vmem:[#allocation7 + $0x1c8] sm:$0xff]  ;;  %v507_v33 = vld [vmem:[%s1663_s6] sm:$0x3] }
  0xe2   :  { %719 = vmatpush.msrb.mxu2 %v613_v16  ;;  %739 = vmatpush.msrb.mxu3 %v645_v19  ;;  %v811_v16 = vld [vmem:[#allocation7 + $0x138] sm:$0xff]  ;;  %v796_v19 = vld [vmem:[#allocation7 + $0xc0] sm:$0xff] }
  0xe3   :  { %683 = vmatpush.msrb.mxu0 %v604_v37  ;;  %703 = vmatpush.msrb.mxu1 %v636_v39  ;;  %v775_v35 = vld [vmem:[#allocation7 + $0x18] sm:$0xff]  ;;  %v806_v37 = vld [vmem:[#allocation7 + $0x110] sm:$0xff] }
  0xe4   :  { %720 = vmatpush.msrb.mxu2 %v611_v22  ;;  %740 = vmatpush.msrb.mxu3 %v643_v25  ;;  %v778_v22 = vld [vmem:[#allocation7 + $0x30] sm:$0xff] }
  0xe5   :  { %684 = vmatpush.msrb.mxu0 %v602_v41  ;;  %704 = vmatpush.msrb.mxu1 %v634_v43  ;;  %v826_v25 = vld [vmem:[#allocation7 + $0x1b0] sm:$0xff]  ;;  %v805_v41 = vld [vmem:[#allocation7 + $0x108] sm:$0xff] }
  0xe6   :  { %721 = vmatpush.msrb.mxu2 %v609_v27  ;;  %741 = vmatpush.msrb.mxu3 %v641_v30  ;;  %v794_v27 = vld [vmem:[#allocation7 + $0xb0] sm:$0xff]  ;;  %v776_v30 = vld [vmem:[#allocation7 + $0x20] sm:$0xff]  ;;  %v773_v43 = vld [vmem:[#allocation7 + $0x8] sm:$0xff] }
  0xe7   :  { %685 = vmatpush.msrb.mxu0 %v600_v47  ;;  %705 = vmatpush.msrb.mxu1 %v632_v53  ;;  %v774_v39 = vld [vmem:[#allocation7 + $0x10] sm:$0xff]  ;;  %v509_v47 = vperm.slane %v507_v33, 0 }
  0xe8   :  { %722 = vmatpush.msrb.mxu2 %v607_v32  ;;  %742 = vmatpush.msrb.mxu3 %v639_v34  ;;  %v807_v32 = vld [vmem:[#allocation7 + $0x118] sm:$0xff]  ;;  %v824_v34 = vld [vmem:[#allocation7 + $0x1a0] sm:$0xff] }
  0xea   :  { %723 = vmatpush.msrb.mxu2 %v605_v36  ;;  %743 = vmatpush.msrb.mxu3 %v637_v38  ;;  %v792_v36 = vld [vmem:[#allocation7 + $0xa0] sm:$0xff]  ;;  %v823_v38 = vld [vmem:[#allocation7 + $0x198] sm:$0xff] }
  0xec   :  { %724 = vmatpush.msrb.mxu2 %v603_v40  ;;  %744 = vmatpush.msrb.mxu3 %v635_v42  ;;  %v791_v40 = vld [vmem:[#allocation7 + $0x98] sm:$0xff]  ;;  %v822_v42 = vld [vmem:[#allocation7 + $0x190] sm:$0xff] }
  0xee   :  { %725 = vmatpush.msrb.mxu2 %v601_v44  ;;  %745 = vmatpush.msrb.mxu3 %v633_v49  ;;  %v790_v44 = vld [vmem:[#allocation7 + $0x90] sm:$0xff]  ;;  %v789_v49 = vld [vmem:[#allocation7 + $0x88] sm:$0xff] }
 0x144   :  { %v376_v59 = vpop.f32.mrf.mxu0  ;;  %v396_v9 = vpop.f32.mrf.mxu1 }
 0x145   :  { %v377_v2 = vadd.f32 %v1427_v56, %v376_v59  ;;  %v817_v56 = vld [vmem:[#allocation7 + $0x168] sm:$0xff]  ;;  %v802_v59 = vld [vmem:[#allocation7 + $0xf0] sm:$0xff] }
 0x147   :  { %v397_v12 = vadd.f32 %v396_v9, %v377_v2  ;;  %v783_v2 = vld [vmem:[#allocation7 + $0x58] sm:$0xff]  ;;  %v830_v9 = vld [vmem:[#allocation7 + $0x1d0] sm:$0xff] }
 0x14b   :  { %v436_v21 = vpop.f32.mrf.mxu3 }
 0x152   :  { %v416_v15 = vpop.f32.mrf.mxu2 }
 0x153   :  { %v417_v18 = vadd.f32 %v416_v15, %v397_v12  ;;  %v812_v12 = vld [vmem:[#allocation7 + $0x140] sm:$0xff]  ;;  %v797_v15 = vld [vmem:[#allocation7 + $0xc8] sm:$0xff] }
 0x155   :  { %v437_v24 = vadd.f32 %v436_v21, %v417_v18  ;;  %v779_v18 = vld [vmem:[#allocation7 + $0x38] sm:$0xff] }
 0x156   :  { %v827_v21 = vld [vmem:[#allocation7 + $0x1b8] sm:$0xff] }
 0x157   :  { %v439_v29 = vmax.f32 %v437_v24, 0.0  ;;  %v809_v24 = vld [vmem:[#allocation7 + $0x128] sm:$0xff] }
 0x159   :  { %440 = vst [vmem:[#allocation4] sm:$0x1f] %v439_v29  ;;  %v825_v29 = vld [vmem:[#allocation7 + $0x1a8] sm:$0xff] }
 0x160   :  { %v441_v45 = vld [vmem:[#allocation4 + $0x1] sm:$0xf] }
 0x161   :  { %v442_v46 = vld [vmem:[#allocation4] sm:$0xf]  ;;  %529 = vmatmul.f32.vlgmr.msra.gmra.mxu0 %v441_v45  ;;  %569 = vmatmul.f32.vlgmr.msra.gmra.mxu2 %v441_v45 }
 0x162   :  { %549 = vmatmul.f32.vlgmr.msra.gmra.mxu1 %v442_v46  ;;  %589 = vmatmul.f32.vlgmr.msra.gmra.mxu3 %v442_v46  ;;  %v804_v45 = vld [vmem:[#allocation7 + $0x100] sm:$0xff]  ;;  %v821_v46 = vld [vmem:[#allocation7 + $0x188] sm:$0xff] }
 0x163   :  { %886 = vmatpush.msra.mxu2 %v819_v48  ;;  %840 = vmatpush.msra.mxu0 %v787_v50  ;;  %v772_v48 = vld [vmem:[#allocation7] sm:$0xff] }
 0x164   :  { %909 = vmatpush.msra.mxu3 %v835_v52  ;;  %863 = vmatpush.msra.mxu1 %v803_v55  ;;  %v820_v50 = vld [vmem:[#allocation7 + $0x180] sm:$0xff] }
 0x165   :  { %887 = vmatpush.msra.mxu2 %v818_v51  ;;  %841 = vmatpush.msra.mxu0 %v786_v54  ;;  %v788_v52 = vld [vmem:[#allocation7 + $0x80] sm:$0xff] }
 0x166   :  { %910 = vmatpush.msra.mxu3 %v834_v57  ;;  %864 = vmatpush.msra.mxu1 %v802_v59 }
 0x167   :  { %888 = vmatpush.msra.mxu2 %v817_v56  ;;  %842 = vmatpush.msra.mxu0 %v785_v58  ;;  %v510_v56 = vperm.slane %v507_v33, 1  ;;  %v948_v33 = vld [vmem:[#allocation9 + $0x40] sm:$0xff] }
 0x168   :  { %911 = vmatpush.msra.mxu3 %v833_v61  ;;  %865 = vmatpush.msra.mxu1 %v801_v63  ;;  %v955_v63 = vld [vmem:[#allocation9 + $0x78] sm:$0xff] }
 0x169   :  { %889 = vmatpush.msra.mxu2 %v816_v60  ;;  %843 = vmatpush.msra.mxu0 %v784_v62 }
 0x16a   :  { %912 = vmatpush.msra.mxu3 %v832_v1  ;;  %866 = vmatpush.msra.mxu1 %v800_v3  ;;  %v1003_v3 = vld [vmem:[#allocation9 + $0x1f8] sm:$0xff] }
 0x16b   :  { %890 = vmatpush.msra.mxu2 %v815_v0  ;;  %844 = vmatpush.msra.mxu0 %v783_v2  ;;  %v971_v2 = vld [vmem:[#allocation9 + $0xf8] sm:$0xff] }
 0x16c   :  { %913 = vmatpush.msra.mxu3 %v831_v5  ;;  %867 = vmatpush.msra.mxu1 %v799_v7  ;;  %v766_v5 = vld [vmem:[#allocation2 + $0x1] ss:$2 sm:$0xff] }
 0x16d   :  { %891 = vmatpush.msra.mxu2 %v814_v4  ;;  %845 = vmatpush.msra.mxu0 %v782_v6  ;;  %v764_v4 = vld [vmem:[#allocation2] ss:$2 sm:$0xff]  ;;  %v770_v7 = vld [vmem:[#allocation2 + $0x3] ss:$2 sm:$0xff] }
 0x16e   :  { %914 = vmatpush.msra.mxu3 %v830_v9  ;;  %868 = vmatpush.msra.mxu1 %v798_v11  ;;  %v768_v6 = vld [vmem:[#allocation2 + $0x2] ss:$2 sm:$0xff]  ;;  %v767_v9 = vld [vmem:[#allocation2 + $0x11] ss:$2 sm:$0x1] }
 0x16f   :  { %892 = vmatpush.msra.mxu2 %v813_v8  ;;  %846 = vmatpush.msra.mxu0 %v781_v10  ;;  %v765_v8 = vld [vmem:[#allocation2 + $0x10] ss:$2 sm:$0x1]  ;;  %v769_v10 = vld [vmem:[#allocation2 + $0x12] ss:$2 sm:$0x1] }
 0x170   :  { %915 = vmatpush.msra.mxu3 %v829_v13  ;;  %869 = vmatpush.msra.mxu1 %v797_v15  ;;  %v771_v11 = vld [vmem:[#allocation2 + $0x13] ss:$2 sm:$0x1]  ;;  %v970_v13 = vld [vmem:[#allocation9 + $0xf0] sm:$0xff] }
 0x171   :  { %893 = vmatpush.msra.mxu2 %v812_v12  ;;  %847 = vmatpush.msra.mxu0 %v780_v14  ;;  %v954_v12 = vld [vmem:[#allocation9 + $0x70] sm:$0xff]  ;;  %v953_v15 = vld [vmem:[#allocation9 + $0x68] sm:$0xff] }
 0x172   :  { %916 = vmatpush.msra.mxu3 %v828_v17  ;;  %870 = vmatpush.msra.mxu1 %v796_v19  ;;  %v1002_v14 = vld [vmem:[#allocation9 + $0x1f0] sm:$0xff]  ;;  %v1001_v17 = vld [vmem:[#allocation9 + $0x1e8] sm:$0xff]  ;;  %v968_v19 = vld [vmem:[#allocation9 + $0xe0] sm:$0xff] }
 0x173   :  { %894 = vmatpush.msra.mxu2 %v811_v16  ;;  %848 = vmatpush.msra.mxu0 %v779_v18  ;;  %v969_v16 = vld [vmem:[#allocation9 + $0xe8] sm:$0xff]  ;;  %v952_v18 = vld [vmem:[#allocation9 + $0x60] sm:$0xff] }
 0x174   :  { %917 = vmatpush.msra.mxu3 %v827_v21  ;;  %871 = vmatpush.msra.mxu1 %v795_v23  ;;  %v951_v21 = vld [vmem:[#allocation9 + $0x58] sm:$0xff] }
 0x175   :  { %895 = vmatpush.msra.mxu2 %v810_v20  ;;  %849 = vmatpush.msra.mxu0 %v778_v22  ;;  %v1000_v20 = vld [vmem:[#allocation9 + $0x1e0] sm:$0xff]  ;;  %v967_v22 = vld [vmem:[#allocation9 + $0xd8] sm:$0xff] }
 0x176   :  { %918 = vmatpush.msra.mxu3 %v826_v25  ;;  %872 = vmatpush.msra.mxu1 %v794_v27  ;;  %v987_v23 = vld [vmem:[#allocation9 + $0x178] sm:$0xff]  ;;  %v950_v25 = vld [vmem:[#allocation9 + $0x50] sm:$0xff] }
 0x177   :  { %896 = vmatpush.msra.mxu2 %v809_v24  ;;  %850 = vmatpush.msra.mxu0 %v777_v26  ;;  %v999_v24 = vld [vmem:[#allocation9 + $0x1d8] sm:$0xff]  ;;  %v966_v26 = vld [vmem:[#allocation9 + $0xd0] sm:$0xff] }
 0x178   :  { %919 = vmatpush.msra.mxu3 %v825_v29  ;;  %873 = vmatpush.msra.mxu1 %v793_v31  ;;  %v986_v27 = vld [vmem:[#allocation9 + $0x170] sm:$0xff]  ;;  %v949_v29 = vld [vmem:[#allocation9 + $0x48] sm:$0xff] }
 0x179   :  { %897 = vmatpush.msra.mxu2 %v808_v28  ;;  %851 = vmatpush.msra.mxu0 %v776_v30  ;;  %v998_v28 = vld [vmem:[#allocation9 + $0x1d0] sm:$0xff]  ;;  %v965_v30 = vld [vmem:[#allocation9 + $0xc8] sm:$0xff] }
 0x17a   :  { %920 = vmatpush.msra.mxu3 %v824_v34  ;;  %874 = vmatpush.msra.mxu1 %v792_v36  ;;  %v985_v31 = vld [vmem:[#allocation9 + $0x168] sm:$0xff]  ;;  %v964_v34 = vld [vmem:[#allocation9 + $0xc0] sm:$0xff] }
 0x17b   :  { %898 = vmatpush.msra.mxu2 %v807_v32  ;;  %852 = vmatpush.msra.mxu0 %v775_v35  ;;  %v997_v32 = vld [vmem:[#allocation9 + $0x1c8] sm:$0xff]  ;;  %v984_v35 = vld [vmem:[#allocation9 + $0x160] sm:$0xff] }
 0x17c   :  { %921 = vmatpush.msra.mxu3 %v823_v38  ;;  %875 = vmatpush.msra.mxu1 %v791_v40  ;;  %v996_v36 = vld [vmem:[#allocation9 + $0x1c0] sm:$0xff]  ;;  %v963_v38 = vld [vmem:[#allocation9 + $0xb8] sm:$0xff] }
 0x17d   :  { %899 = vmatpush.msra.mxu2 %v806_v37  ;;  %853 = vmatpush.msra.mxu0 %v774_v39  ;;  %v947_v37 = vld [vmem:[#allocation9 + $0x38] sm:$0xff] }
 0x17e   :  { %922 = vmatpush.msra.mxu3 %v822_v42  ;;  %876 = vmatpush.msra.mxu1 %v790_v44  ;;  %v983_v39 = vld [vmem:[#allocation9 + $0x158] sm:$0xff]  ;;  %v962_v42 = vld [vmem:[#allocation9 + $0xb0] sm:$0xff] }
 0x17f   :  { %900 = vmatpush.msra.mxu2 %v805_v41  ;;  %854 = vmatpush.msra.mxu0 %v773_v43  ;;  %v995_v40 = vld [vmem:[#allocation9 + $0x1b8] sm:$0xff]  ;;  %v946_v41 = vld [vmem:[#allocation9 + $0x30] sm:$0xff] }
 0x180   :  { %923 = vmatpush.msra.mxu3 %v821_v46  ;;  %877 = vmatpush.msra.mxu1 %v789_v49  ;;  %v982_v43 = vld [vmem:[#allocation9 + $0x150] sm:$0xff]  ;;  %v961_v46 = vld [vmem:[#allocation9 + $0xa8] sm:$0xff]  ;;  %v944_v49 = vld [vmem:[#allocation9 + $0x20] sm:$0xff] }
 0x181   :  { %901 = vmatpush.msra.mxu2 %v804_v45  ;;  %855 = vmatpush.msra.mxu0 %v772_v48  ;;  %v994_v44 = vld [vmem:[#allocation9 + $0x1b0] sm:$0xff]  ;;  %v945_v45 = vld [vmem:[#allocation9 + $0x28] sm:$0xff] }
 0x182   :  { %924 = vmatpush.msra.mxu3 %v820_v50  ;;  %878 = vmatpush.msra.mxu1 %v788_v52  ;;  %v993_v48 = vld [vmem:[#allocation9 + $0x1a8] sm:$0xff]  ;;  %v960_v50 = vld [vmem:[#allocation9 + $0xa0] sm:$0xff] }
 0x183   :  { %v992_v52 = vld [vmem:[#allocation9 + $0x1a0] sm:$0xff] }
 0x1de   :  { %v530_v51 = vpop.f32.mrf.mxu0 }
 0x1df   :  { %v531_v53 = vadd.f32 %v530_v51, %v509_v47  ;;  %v550_v54 = vpop.f32.mrf.mxu1  ;;  %v981_v47 = vld [vmem:[#allocation9 + $0x148] sm:$0xff]  ;;  %v980_v51 = vld [vmem:[#allocation9 + $0x140] sm:$0xff] }
 0x1e1   :  { %v551_v55 = vadd.f32 %v550_v54, %v531_v53  ;;  %v943_v53 = vld [vmem:[#allocation9 + $0x18] sm:$0xff] }
 0x1e2   :  { %v959_v54 = vld [vmem:[#allocation9 + $0x98] sm:$0xff] }
 0x1e3   :  { %v593_v57 = vmax.f32 %v551_v55, 0.0  ;;  %v979_v55 = vld [vmem:[#allocation9 + $0x138] sm:$0xff] }
 0x1e4   :  { %v570_v58 = vpop.f32.mrf.mxu2 }
 0x1e5   :  { %595 = vst [vmem:[#allocation5] ss:$2 sm:$0xf] %v593_v57  ;;  %v571_v59 = vadd.f32 %v570_v58, %v510_v56  ;;  %v590_v60 = vpop.f32.mrf.mxu3  ;;  %v991_v56 = vld [vmem:[#allocation9 + $0x198] sm:$0xff]  ;;  %v942_v57 = vld [vmem:[#allocation9 + $0x10] sm:$0xff] }
 0x1e6   :  { %v958_v58 = vld [vmem:[#allocation9 + $0x90] sm:$0xff] }
 0x1e7   :  { %v591_v61 = vadd.f32 %v590_v60, %v571_v59  ;;  %v978_v59 = vld [vmem:[#allocation9 + $0x130] sm:$0xff]  ;;  %v664_v60 = vld [vmem:[%s1665_s8] sm:$0x3] }
 0x1e9   :  { %v594_v62 = vmax.f32 %v591_v61, 0.0  ;;  %v990_v61 = vld [vmem:[#allocation9 + $0x190] sm:$0xff] }
 0x1eb   :  { %597 = vst [vmem:[#allocation5 + $0x1] ss:$2 sm:$0xf] %v594_v62  ;;  %v941_v62 = vld [vmem:[#allocation9 + $0x8] sm:$0xff] }
 0x1f2   :  { %v598_v0 = vld [vmem:[#allocation5 + $0x1] sm:$0x7f] }
 0x1f3   :  { %v599_v1 = vld [vmem:[#allocation5] sm:$0x7f]  ;;  %686 = vmatmul.f32.vlgmr.msrb.gmra.mxu0 %v598_v0  ;;  %726 = vmatmul.f32.vlgmr.msrb.gmra.mxu2 %v598_v0 }
 0x1f4   :  { %706 = vmatmul.f32.vlgmr.msrb.gmra.mxu1 %v599_v1  ;;  %746 = vmatmul.f32.vlgmr.msrb.gmra.mxu3 %v599_v1  ;;  %v977_v0 = vld [vmem:[#allocation9 + $0x128] sm:$0xff] }
 0x1f5   :  { %1008 = vmatpush.msrb.mxu0 %v955_v63  ;;  %1028 = vmatpush.msrb.mxu1 %v971_v2  ;;  %v957_v63 = vld [vmem:[#allocation9 + $0x88] sm:$0xff]  ;;  %v940_v2 = vld [vmem:[#allocation9] sm:$0xff] }
 0x1f6   :  { %1068 = vmatpush.msrb.mxu3 %v1003_v3  ;;  %1048 = vmatpush.msrb.mxu2 %v987_v23  ;;  %v989_v1 = vld [vmem:[#allocation9 + $0x188] sm:$0xff]  ;;  %v956_v3 = vld [vmem:[#allocation9 + $0x80] sm:$0xff] }
 0x1f7   :  { %1009 = vmatpush.msrb.mxu0 %v954_v12  ;;  %1029 = vmatpush.msrb.mxu1 %v970_v13  ;;  %v973_v12 = vld [vmem:[#allocation9 + $0x108] sm:$0xff] }
 0x1f8   :  { %1069 = vmatpush.msrb.mxu3 %v1002_v14  ;;  %1049 = vmatpush.msrb.mxu2 %v986_v27  ;;  %v972_v14 = vld [vmem:[#allocation9 + $0x100] sm:$0xff] }
 0x1f9   :  { %1010 = vmatpush.msrb.mxu0 %v953_v15  ;;  %1030 = vmatpush.msrb.mxu1 %v969_v16  ;;  %v667_v15 = vperm.slane %v664_v60, 1  ;;  %v1428_v16 = vld [vmem:[%s1659_s2] ss:$0 sm:$0xff] }
 0x1fa   :  { %1070 = vmatpush.msrb.mxu3 %v1001_v17  ;;  %1050 = vmatpush.msrb.mxu2 %v985_v31  ;;  %v1122_v17 = vld [vmem:[#allocation11 + $0xf0] sm:$0xff] }
 0x1fb   :  { %856 = vmatmul.f32.vlgmr.msra.gmra.mxu0 %v764_v4  ;;  %902 = vmatmul.f32.vlgmr.msra.gmra.mxu2 %v768_v6  ;;  %v976_v4 = vld [vmem:[#allocation9 + $0x120] sm:$0xff] }
 0x1fc   :  { %879 = vmatmul.f32.vlgmr.msra.gmra.mxu1 %v766_v5  ;;  %925 = vmatmul.f32.vlgmr.msra.gmra.mxu3 %v770_v7  ;;  %v666_v5 = vperm.slane %v664_v60, 0  ;;  %v988_v6 = vld [vmem:[#allocation9 + $0x180] sm:$0xff]  ;;  %v975_v7 = vld [vmem:[#allocation9 + $0x118] sm:$0xff]  ;;  %v1149_v60 = vld [vmem:[#allocation11 + $0x1c8] sm:$0xff] }
 0x1fd   :  { %1011 = vmatpush.msrb.mxu0 %v952_v18  ;;  %1031 = vmatpush.msrb.mxu1 %v968_v19  ;;  %v1154_v18 = vld [vmem:[#allocation11 + $0x1f0] sm:$0xff]  ;;  %v1123_v19 = vld [vmem:[#allocation11 + $0xf8] sm:$0xff] }
 0x1fe   :  { %1071 = vmatpush.msrb.mxu3 %v1000_v20  ;;  %1051 = vmatpush.msrb.mxu2 %v984_v35 }
 0x1ff   :  { %1012 = vmatpush.msrb.mxu0 %v951_v21  ;;  %1032 = vmatpush.msrb.mxu1 %v967_v22  ;;  %v1155_v22 = vld [vmem:[#allocation11 + $0x1f8] sm:$0xff] }
 0x200   :  { %1072 = vmatpush.msrb.mxu3 %v999_v24  ;;  %1052 = vmatpush.msrb.mxu2 %v983_v39 }
 0x201   :  { %1013 = vmatpush.msrb.mxu0 %v950_v25  ;;  %1033 = vmatpush.msrb.mxu1 %v966_v26 }
 0x202   :  { %1073 = vmatpush.msrb.mxu3 %v998_v28  ;;  %1053 = vmatpush.msrb.mxu2 %v982_v43 }
 0x203   :  { %859 = vmatmul.f32.gmra.mxu0 %v765_v8  ;;  %905 = vmatmul.f32.gmra.mxu2 %v769_v10  ;;  %v974_v8 = vld [vmem:[#allocation9 + $0x110] sm:$0xff] }
 0x204   :  { %882 = vmatmul.f32.gmra.mxu1 %v767_v9  ;;  %928 = vmatmul.f32.gmra.mxu3 %v771_v11 }
 0x205   :  { %1014 = vmatpush.msrb.mxu0 %v949_v29  ;;  %1034 = vmatpush.msrb.mxu1 %v965_v30 }
 0x206   :  { %1074 = vmatpush.msrb.mxu3 %v997_v32  ;;  %1054 = vmatpush.msrb.mxu2 %v981_v47 }
 0x207   :  { %1015 = vmatpush.msrb.mxu0 %v948_v33  ;;  %1035 = vmatpush.msrb.mxu1 %v964_v34 }
 0x208   :  { %1075 = vmatpush.msrb.mxu3 %v996_v36  ;;  %1055 = vmatpush.msrb.mxu2 %v980_v51  ;;  %v1121_v51 = vld [vmem:[#allocation11 + $0xe8] sm:$0xff] }
 0x209   :  { %1016 = vmatpush.msrb.mxu0 %v947_v37  ;;  %1036 = vmatpush.msrb.mxu1 %v963_v38 }
 0x20a   :  { %1076 = vmatpush.msrb.mxu3 %v995_v40  ;;  %1056 = vmatpush.msrb.mxu2 %v979_v55  ;;  %v1119_v55 = vld [vmem:[#allocation11 + $0xd8] sm:$0xff] }
 0x20b   :  { %1017 = vmatpush.msrb.mxu0 %v946_v41  ;;  %1037 = vmatpush.msrb.mxu1 %v962_v42 }
 0x20c   :  { %1077 = vmatpush.msrb.mxu3 %v994_v44  ;;  %1057 = vmatpush.msrb.mxu2 %v978_v59  ;;  %v1117_v59 = vld [vmem:[#allocation11 + $0xc8] sm:$0xff] }
 0x20d   :  { %1018 = vmatpush.msrb.mxu0 %v945_v45  ;;  %1038 = vmatpush.msrb.mxu1 %v961_v46 }
 0x20e   :  { %1078 = vmatpush.msrb.mxu3 %v993_v48  ;;  %1058 = vmatpush.msrb.mxu2 %v977_v0  ;;  %v1147_v0 = vld [vmem:[#allocation11 + $0x1b8] sm:$0xff] }
 0x20f   :  { %1019 = vmatpush.msrb.mxu0 %v944_v49  ;;  %1039 = vmatpush.msrb.mxu1 %v960_v50  ;;  %v1120_v49 = vld [vmem:[#allocation11 + $0xe0] sm:$0xff] }
 0x210   :  { %1079 = vmatpush.msrb.mxu3 %v992_v52  ;;  %1059 = vmatpush.msrb.mxu2 %v976_v4  ;;  %v1152_v50 = vld [vmem:[#allocation11 + $0x1e0] sm:$0xff]  ;;  %v1153_v52 = vld [vmem:[#allocation11 + $0x1e8] sm:$0xff] }
 0x211   :  { %1020 = vmatpush.msrb.mxu0 %v943_v53  ;;  %1040 = vmatpush.msrb.mxu1 %v959_v54  ;;  %v1118_v53 = vld [vmem:[#allocation11 + $0xd0] sm:$0xff]  ;;  %v1145_v4 = vld [vmem:[#allocation11 + $0x1a8] sm:$0xff] }
 0x212   :  { %1080 = vmatpush.msrb.mxu3 %v991_v56  ;;  %1060 = vmatpush.msrb.mxu2 %v975_v7  ;;  %v1150_v54 = vld [vmem:[#allocation11 + $0x1d0] sm:$0xff]  ;;  %v1151_v56 = vld [vmem:[#allocation11 + $0x1d8] sm:$0xff] }
 0x213   :  { %1021 = vmatpush.msrb.mxu0 %v942_v57  ;;  %1041 = vmatpush.msrb.mxu1 %v958_v58  ;;  %v1116_v57 = vld [vmem:[#allocation11 + $0xc0] sm:$0xff]  ;;  %v1111_v7 = vld [vmem:[#allocation11 + $0x98] sm:$0xff] }
 0x214   :  { %1081 = vmatpush.msrb.mxu3 %v990_v61  ;;  %1061 = vmatpush.msrb.mxu2 %v974_v8  ;;  %v1148_v58 = vld [vmem:[#allocation11 + $0x1c0] sm:$0xff]  ;;  %v1114_v61 = vld [vmem:[#allocation11 + $0xb0] sm:$0xff]  ;;  %v1143_v8 = vld [vmem:[#allocation11 + $0x198] sm:$0xff] }
 0x215   :  { %1022 = vmatpush.msrb.mxu0 %v941_v62  ;;  %1042 = vmatpush.msrb.mxu1 %v957_v63  ;;  %v1146_v62 = vld [vmem:[#allocation11 + $0x1b0] sm:$0xff]  ;;  %v1115_v63 = vld [vmem:[#allocation11 + $0xb8] sm:$0xff] }
 0x216   :  { %1082 = vmatpush.msrb.mxu3 %v989_v1  ;;  %1062 = vmatpush.msrb.mxu2 %v973_v12  ;;  %v1112_v1 = vld [vmem:[#allocation11 + $0xa0] sm:$0xff]  ;;  %v1141_v12 = vld [vmem:[#allocation11 + $0x188] sm:$0xff] }
 0x217   :  { %1023 = vmatpush.msrb.mxu0 %v940_v2  ;;  %1043 = vmatpush.msrb.mxu1 %v956_v3  ;;  %v1144_v2 = vld [vmem:[#allocation11 + $0x1a0] sm:$0xff]  ;;  %v1113_v3 = vld [vmem:[#allocation11 + $0xa8] sm:$0xff] }
 0x218   :  { %1083 = vmatpush.msrb.mxu3 %v988_v6  ;;  %1063 = vmatpush.msrb.mxu2 %v972_v14  ;;  %v1142_v6 = vld [vmem:[#allocation11 + $0x190] sm:$0xff] }
 0x219   :  { %1162 = vmatpush.msra.mxu0 %v1122_v17  ;;  %1182 = vmatpush.msra.mxu1 %v1154_v18  ;;  %v1138_v14 = vld [vmem:[#allocation11 + $0x170] sm:$0xff]  ;;  %v1104_v17 = vld [vmem:[#allocation11 + $0x60] sm:$0xff] }
 0x21a   :  { %1202 = vmatpush.msra.mxu2 %v1123_v19  ;;  %1222 = vmatpush.msra.mxu3 %v1155_v22  ;;  %v1136_v18 = vld [vmem:[#allocation11 + $0x160] sm:$0xff]  ;;  %v1105_v19 = vld [vmem:[#allocation11 + $0x68] sm:$0xff]  ;;  %v1134_v22 = vld [vmem:[#allocation11 + $0x150] sm:$0xff] }
 0x21b   :  { %1163 = vmatpush.msra.mxu0 %v1120_v49  ;;  %1183 = vmatpush.msra.mxu1 %v1152_v50  ;;  %v1276_v49 = vld [vmem:[#allocation12 + $0xe0] sm:$0xff] }
 0x21c   :  { %1203 = vmatpush.msra.mxu2 %v1121_v51  ;;  %1223 = vmatpush.msra.mxu3 %v1153_v52  ;;  %v1308_v50 = vld [vmem:[#allocation12 + $0x1e0] sm:$0xff]  ;;  %v1277_v51 = vld [vmem:[#allocation12 + $0xe8] sm:$0xff] }
 0x21d   :  { %1164 = vmatpush.msra.mxu0 %v1118_v53  ;;  %1184 = vmatpush.msra.mxu1 %v1150_v54  ;;  %v1309_v52 = vld [vmem:[#allocation12 + $0x1e8] sm:$0xff]  ;;  %v1274_v53 = vld [vmem:[#allocation12 + $0xd0] sm:$0xff] }
 0x21e   :  { %1204 = vmatpush.msra.mxu2 %v1119_v55  ;;  %1224 = vmatpush.msra.mxu3 %v1151_v56  ;;  %v1306_v54 = vld [vmem:[#allocation12 + $0x1d0] sm:$0xff]  ;;  %v1275_v55 = vld [vmem:[#allocation12 + $0xd8] sm:$0xff] }
 0x21f   :  { %1165 = vmatpush.msra.mxu0 %v1116_v57  ;;  %1185 = vmatpush.msra.mxu1 %v1148_v58  ;;  %v1307_v56 = vld [vmem:[#allocation12 + $0x1d8] sm:$0xff]  ;;  %v1272_v57 = vld [vmem:[#allocation12 + $0xc0] sm:$0xff] }
 0x220   :  { %1205 = vmatpush.msra.mxu2 %v1117_v59  ;;  %1225 = vmatpush.msra.mxu3 %v1149_v60  ;;  %v1304_v58 = vld [vmem:[#allocation12 + $0x1c0] sm:$0xff]  ;;  %v1273_v59 = vld [vmem:[#allocation12 + $0xc8] sm:$0xff] }
 0x221   :  { %1166 = vmatpush.msra.mxu0 %v1114_v61  ;;  %1186 = vmatpush.msra.mxu1 %v1146_v62  ;;  %v1305_v60 = vld [vmem:[#allocation12 + $0x1c8] sm:$0xff]  ;;  %v1270_v61 = vld [vmem:[#allocation12 + $0xb0] sm:$0xff] }
 0x222   :  { %1206 = vmatpush.msra.mxu2 %v1115_v63  ;;  %1226 = vmatpush.msra.mxu3 %v1147_v0  ;;  %v1302_v62 = vld [vmem:[#allocation12 + $0x1b0] sm:$0xff]  ;;  %v1429_v63 = vld [vmem:[%s1661_s4] ss:$0 sm:$0xff] }
 0x223   :  { %1167 = vmatpush.msra.mxu0 %v1112_v1  ;;  %1187 = vmatpush.msra.mxu1 %v1144_v2  ;;  %v1271_v0 = vld [vmem:[#allocation12 + $0xb8] sm:$0xff] }
 0x224   :  { %1207 = vmatpush.msra.mxu2 %v1113_v3  ;;  %1227 = vmatpush.msra.mxu3 %v1145_v4  ;;  %v1303_v1 = vld [vmem:[#allocation12 + $0x1b8] sm:$0xff] }
 0x225   :  { %1188 = vmatpush.msra.mxu1 %v1142_v6 }
 0x226   :  { %1208 = vmatpush.msra.mxu2 %v1111_v7  ;;  %1228 = vmatpush.msra.mxu3 %v1143_v8 }
 0x228   :  { %1229 = vmatpush.msra.mxu3 %v1141_v12 }
 0x270   :  { %v687_v9 = vpop.f32.mrf.mxu0 }
 0x271   :  { %v707_v10 = vpop.f32.mrf.mxu1  ;;  %v688_v11 = vadd.f32 %v687_v9, %v666_v5  ;;  %v1110_v5 = vld [vmem:[#allocation11 + $0x90] sm:$0xff]  ;;  %v1108_v9 = vld [vmem:[#allocation11 + $0x80] sm:$0xff] }
 0x272   :  { %1168 = vmatpush.msra.mxu0 %v1110_v5 }
 0x273   :  { %v708_v13 = vadd.f32 %v707_v10, %v688_v11  ;;  %v1140_v10 = vld [vmem:[#allocation11 + $0x180] sm:$0xff]  ;;  %v1109_v11 = vld [vmem:[#allocation11 + $0x88] sm:$0xff] }
 0x274   :  { %1169 = vmatpush.msra.mxu0 %v1108_v9  ;;  %1189 = vmatpush.msra.mxu1 %v1140_v10 }
 0x275   :  { %750 = vst [vmem:[#allocation6] ss:$2 sm:$0x7f] %v708_v13  ;;  %1209 = vmatpush.msra.mxu2 %v1109_v11  ;;  %v1106_v13 = vld [vmem:[#allocation11 + $0x70] sm:$0xff] }
 0x276   :  { %v727_v20 = vpop.f32.mrf.mxu2  ;;  %1170 = vmatpush.msra.mxu0 %v1106_v13  ;;  %1190 = vmatpush.msra.mxu1 %v1138_v14  ;;  %v1268_v13 = vld [vmem:[#allocation12 + $0xa0] sm:$0xff] }
 0x277   :  { %v747_v21 = vpop.f32.mrf.mxu3  ;;  %v728_v23 = vadd.f32 %v727_v20, %v667_v15  ;;  %v1107_v15 = vld [vmem:[#allocation11 + $0x78] sm:$0xff]  ;;  %v1137_v20 = vld [vmem:[#allocation11 + $0x168] sm:$0xff]  ;;  %v1300_v14 = vld [vmem:[#allocation12 + $0x1a0] sm:$0xff] }
 0x278   :  { %v857_v24 = vpop.f32.mrf.mxu0  ;;  %1210 = vmatpush.msra.mxu2 %v1107_v15  ;;  %1171 = vmatpush.msra.mxu0 %v1104_v17  ;;  %v1269_v15 = vld [vmem:[#allocation12 + $0xa8] sm:$0xff]  ;;  %v1266_v17 = vld [vmem:[#allocation12 + $0x90] sm:$0xff] }
 0x279   :  { %v880_v25 = vpop.f32.mrf.mxu1  ;;  %v858_v26 = vadd.f32 %v1428_v16, %v857_v24  ;;  %v748_v27 = vadd.f32 %v747_v21, %v728_v23  ;;  %1191 = vmatpush.msra.mxu1 %v1136_v18  ;;  %v1102_v21 = vld [vmem:[#allocation11 + $0x50] sm:$0xff]  ;;  %v1103_v23 = vld [vmem:[#allocation11 + $0x58] sm:$0xff] }
 0x27a   :  { %1211 = vmatpush.msra.mxu2 %v1105_v19  ;;  %1172 = vmatpush.msra.mxu0 %v1102_v21  ;;  %v1135_v24 = vld [vmem:[#allocation11 + $0x158] sm:$0xff]  ;;  %v1298_v18 = vld [vmem:[#allocation12 + $0x190] sm:$0xff]  ;;  %v1264_v21 = vld [vmem:[#allocation12 + $0x80] sm:$0xff] }
 0x27b   :  { %752 = vst [vmem:[#allocation6 + $0x1] ss:$2 sm:$0x7f] %v748_v27  ;;  %v881_v28 = vadd.f32 %v880_v25, %v858_v26  ;;  %1192 = vmatpush.msra.mxu1 %v1134_v22  ;;  %v1100_v25 = vld [vmem:[#allocation11 + $0x40] sm:$0xff]  ;;  %v1101_v27 = vld [vmem:[#allocation11 + $0x48] sm:$0xff]  ;;  %v1267_v19 = vld [vmem:[#allocation12 + $0x98] sm:$0xff] }
 0x27c   :  { %1212 = vmatpush.msra.mxu2 %v1103_v23  ;;  %v1132_v26 = vld [vmem:[#allocation11 + $0x140] sm:$0xff]  ;;  %1173 = vmatpush.msra.mxu0 %v1100_v25  ;;  %v1265_v23 = vld [vmem:[#allocation12 + $0x88] sm:$0xff]  ;;  %v1262_v25 = vld [vmem:[#allocation12 + $0x70] sm:$0xff] }
 0x27d   :  { %1193 = vmatpush.msra.mxu1 %v1132_v26  ;;  %v1296_v22 = vld [vmem:[#allocation12 + $0x180] sm:$0xff]  ;;  %v1294_v26 = vld [vmem:[#allocation12 + $0x170] sm:$0xff] }
 0x27e   :  { %v903_v29 = vpop.f32.mrf.mxu2  ;;  %1213 = vmatpush.msra.mxu2 %v1101_v27  ;;  %v1263_v27 = vld [vmem:[#allocation12 + $0x78] sm:$0xff] }
 0x27f   :  { %v926_v30 = vpop.f32.mrf.mxu3  ;;  %v904_v31 = vadd.f32 %v903_v29, %v881_v28  ;;  %v1133_v28 = vld [vmem:[#allocation11 + $0x148] sm:$0xff]  ;;  %v1098_v29 = vld [vmem:[#allocation11 + $0x30] sm:$0xff] }
 0x280   :  { %v860_v32 = vpop.f32.mrf.mxu0  ;;  %1174 = vmatpush.msra.mxu0 %v1098_v29  ;;  %v1260_v29 = vld [vmem:[#allocation12 + $0x60] sm:$0xff] }
 0x281   :  { %v861_v33 = vadd.f32 %v1428_v16, %v860_v32  ;;  %v883_v34 = vpop.f32.mrf.mxu1  ;;  %v927_v35 = vadd.f32 %v926_v30, %v904_v31  ;;  %v1139_v16 = vld [vmem:[#allocation11 + $0x178] sm:$0xff]  ;;  %v1130_v30 = vld [vmem:[#allocation11 + $0x130] sm:$0xff] }
 0x282   :  { %v753_v36 = vld [vmem:[#allocation6] sm:$0xff]  ;;  %v754_v37 = vld [vmem:[#allocation6 + $0x8] sm:$0xff]  ;;  %1230 = vmatpush.msra.mxu3 %v1139_v16  ;;  %1194 = vmatpush.msra.mxu1 %v1130_v30  ;;  %v1301_v16 = vld [vmem:[#allocation12 + $0x1a8] sm:$0xff] }
 0x283   :  { %v932_v38 = vmax.f32 %v927_v35, 0.0  ;;  %v884_v39 = vadd.f32 %v883_v34, %v861_v33  ;;  %755 = vst [vmem:[%s1666_s9] sm:$0xff] %v753_v36  ;;  %v1099_v31 = vld [vmem:[#allocation11 + $0x38] sm:$0xff]  ;;  %v1096_v33 = vld [vmem:[#allocation11 + $0x20] sm:$0xff]  ;;  %v1097_v35 = vld [vmem:[#allocation11 + $0x28] sm:$0xff] }
 0x284   :  { %756 = vst [vmem:[%s1666_s9 + $0x8] sm:$0xff] %v754_v37  ;;  %1231 = vmatpush.msra.mxu3 %v1137_v20  ;;  %v1131_v32 = vld [vmem:[#allocation11 + $0x138] sm:$0xff]  ;;  %v1128_v34 = vld [vmem:[#allocation11 + $0x120] sm:$0xff]  ;;  %v1129_v36 = vld [vmem:[#allocation11 + $0x128] sm:$0xff]  ;;  %1214 = vmatpush.msra.mxu2 %v1099_v31 }
 0x285   :  { %934 = vst [vmem:[#allocation3 + $0x2] sm:$0xff] %v932_v38  ;;  %v1094_v37 = vld [vmem:[#allocation11 + $0x10] sm:$0xff]  ;;  %1175 = vmatpush.msra.mxu0 %v1096_v33  ;;  %1195 = vmatpush.msra.mxu1 %v1128_v34  ;;  %v1299_v20 = vld [vmem:[#allocation12 + $0x198] sm:$0xff]  ;;  %v1292_v30 = vld [vmem:[#allocation12 + $0x160] sm:$0xff] }
 0x286   :  { %v906_v40 = vpop.f32.mrf.mxu2  ;;  %1232 = vmatpush.msra.mxu3 %v1135_v24  ;;  %v1126_v38 = vld [vmem:[#allocation11 + $0x110] sm:$0xff]  ;;  %1215 = vmatpush.msra.mxu2 %v1097_v35  ;;  %v1297_v24 = vld [vmem:[#allocation12 + $0x188] sm:$0xff]  ;;  %v1259_v35 = vld [vmem:[#allocation12 + $0x58] sm:$0xff] }
 0x287   :  { %v929_v41 = vpop.f32.mrf.mxu3  ;;  %v907_v42 = vadd.f32 %v906_v40, %v884_v39  ;;  %v1095_v39 = vld [vmem:[#allocation11 + $0x18] sm:$0xff]  ;;  %1176 = vmatpush.msra.mxu0 %v1094_v37  ;;  %1196 = vmatpush.msra.mxu1 %v1126_v38  ;;  %v1261_v31 = vld [vmem:[#allocation12 + $0x68] sm:$0xff]  ;;  %v1258_v33 = vld [vmem:[#allocation12 + $0x50] sm:$0xff] }
 0x288   :  { %1233 = vmatpush.msra.mxu3 %v1133_v28  ;;  %v1127_v40 = vld [vmem:[#allocation11 + $0x118] sm:$0xff]  ;;  %1216 = vmatpush.msra.mxu2 %v1095_v39  ;;  %v1290_v34 = vld [vmem:[#allocation12 + $0x150] sm:$0xff]  ;;  %v1256_v37 = vld [vmem:[#allocation12 + $0x40] sm:$0xff] }
 0x289   :  { %v930_v43 = vadd.f32 %v929_v41, %v907_v42  ;;  %v1092_v41 = vld [vmem:[#allocation11] sm:$0xff]  ;;  %v1295_v28 = vld [vmem:[#allocation12 + $0x178] sm:$0xff]  ;;  %v1257_v39 = vld [vmem:[#allocation12 + $0x48] sm:$0xff] }
 0x28a   :  { %1234 = vmatpush.msra.mxu3 %v1131_v32  ;;  %v1124_v42 = vld [vmem:[#allocation11 + $0x100] sm:$0xff]  ;;  %1177 = vmatpush.msra.mxu0 %v1092_v41  ;;  %v1293_v32 = vld [vmem:[#allocation12 + $0x168] sm:$0xff]  ;;  %v1254_v41 = vld [vmem:[#allocation12 + $0x30] sm:$0xff] }
 0x28b   :  { %v933_v44 = vmax.f32 %v930_v43, 0.0  ;;  %v1093_v43 = vld [vmem:[#allocation11 + $0x8] sm:$0xff]  ;;  %1197 = vmatpush.msra.mxu1 %v1124_v42  ;;  %v1288_v38 = vld [vmem:[#allocation12 + $0x140] sm:$0xff]  ;;  %v1286_v42 = vld [vmem:[#allocation12 + $0x130] sm:$0xff] }
 0x28c   :  { %v936_v45 = vld [vmem:[#allocation3] ss:$2 sm:$0x1f]  ;;  %v937_v46 = vld [vmem:[#allocation3 + $0x1] ss:$2 sm:$0x1f]  ;;  %1235 = vmatpush.msra.mxu3 %v1129_v36  ;;  %1217 = vmatpush.msra.mxu2 %v1093_v43 }
 0x28d   :  { %935 = vst [vmem:[#allocation3 + $0xa] sm:$0x1] %v933_v44  ;;  %1024 = vmatmul.f32.vlgmr.msrb.gmra.mxu0 %v936_v45  ;;  %1044 = vmatmul.f32.vlgmr.msrb.gmra.mxu1 %v937_v46  ;;  %v939_v47 = vld [vmem:[#allocation3 + $0x3] ss:$2 sm:$0x1f]  ;;  %v1125_v44 = vld [vmem:[#allocation11 + $0x108] sm:$0xff] }
 0x28e   :  { %1084 = vmatmul.f32.vlgmr.msrb.gmra.mxu3 %v939_v47  ;;  %v1278_v45 = vld [vmem:[#allocation12 + $0xf0] sm:$0xff]  ;;  %v1279_v47 = vld [vmem:[#allocation12 + $0xf8] sm:$0xff] }
 0x28f   :  { %1236 = vmatpush.msra.mxu3 %v1127_v40  ;;  %v1310_v46 = vld [vmem:[#allocation12 + $0x1f0] sm:$0xff]  ;;  %1318 = vmatpush.msrb.mxu0 %v1278_v45  ;;  %v1291_v36 = vld [vmem:[#allocation12 + $0x158] sm:$0xff]  ;;  %v1289_v40 = vld [vmem:[#allocation12 + $0x148] sm:$0xff] }
 0x290   :  { %1338 = vmatpush.msrb.mxu1 %v1310_v46  ;;  %v1255_v43 = vld [vmem:[#allocation12 + $0x38] sm:$0xff]  ;;  %v1252_v45 = vld [vmem:[#allocation12 + $0x20] sm:$0xff] }
 0x291   :  { %1237 = vmatpush.msra.mxu3 %v1125_v44  ;;  %1319 = vmatpush.msrb.mxu0 %v1276_v49  ;;  %v1287_v44 = vld [vmem:[#allocation12 + $0x138] sm:$0xff]  ;;  %v1284_v46 = vld [vmem:[#allocation12 + $0x120] sm:$0xff]  ;;  %v1250_v49 = vld [vmem:[#allocation12 + $0x10] sm:$0xff] }
 0x292   :  { %1339 = vmatpush.msrb.mxu1 %v1308_v50  ;;  %v1282_v50 = vld [vmem:[#allocation12 + $0x110] sm:$0xff] }
 0x293   :  { %1320 = vmatpush.msrb.mxu0 %v1274_v53  ;;  %v1248_v53 = vld [vmem:[#allocation12] sm:$0xff] }
 0x294   :  { %v938_v48 = vld [vmem:[#allocation3 + $0x2] ss:$2 sm:$0x1f]  ;;  %1340 = vmatpush.msrb.mxu1 %v1306_v54  ;;  %v1280_v54 = vld [vmem:[#allocation12 + $0x100] sm:$0xff] }
 0x295   :  { %1064 = vmatmul.f32.vlgmr.msrb.gmra.mxu2 %v938_v48  ;;  %v1311_v48 = vld [vmem:[#allocation12 + $0x1f8] sm:$0xff]  ;;  %1321 = vmatpush.msrb.mxu0 %v1272_v57 }
 0x296   :  { %1358 = vmatpush.msrb.mxu2 %v1279_v47  ;;  %1378 = vmatpush.msrb.mxu3 %v1311_v48  ;;  %v1253_v47 = vld [vmem:[#allocation12 + $0x28] sm:$0xff]  ;;  %v1156_v57 = vld [vmem:[%s1663_s6] sm:$0x3] }
 0x297   :  { %1341 = vmatpush.msrb.mxu1 %v1304_v58  ;;  %1322 = vmatpush.msrb.mxu0 %v1270_v61  ;;  %v1285_v48 = vld [vmem:[#allocation12 + $0x128] sm:$0xff]  ;;  %v1158_v58 = vperm.slane %v1156_v57, 0 }
 0x298   :  { %1359 = vmatpush.msrb.mxu2 %v1277_v51  ;;  %1379 = vmatpush.msrb.mxu3 %v1309_v52  ;;  %v1251_v51 = vld [vmem:[#allocation12 + $0x18] sm:$0xff] }
 0x299   :  { %1342 = vmatpush.msrb.mxu1 %v1302_v62  ;;  %1323 = vmatpush.msrb.mxu0 %v1268_v13  ;;  %v1283_v52 = vld [vmem:[#allocation12 + $0x118] sm:$0xff] }
 0x29a   :  { %1360 = vmatpush.msrb.mxu2 %v1275_v55  ;;  %1380 = vmatpush.msrb.mxu3 %v1307_v56  ;;  %v1249_v55 = vld [vmem:[#allocation12 + $0x8] sm:$0xff] }
 0x29b   :  { %1343 = vmatpush.msrb.mxu1 %v1300_v14  ;;  %1324 = vmatpush.msrb.mxu0 %v1266_v17  ;;  %v1281_v56 = vld [vmem:[#allocation12 + $0x108] sm:$0xff] }
 0x29c   :  { %1361 = vmatpush.msrb.mxu2 %v1273_v59  ;;  %1381 = vmatpush.msrb.mxu3 %v1305_v60 }
 0x29d   :  { %1344 = vmatpush.msrb.mxu1 %v1298_v18  ;;  %1325 = vmatpush.msrb.mxu0 %v1264_v21 }
 0x29e   :  { %1362 = vmatpush.msrb.mxu2 %v1271_v0  ;;  %1382 = vmatpush.msrb.mxu3 %v1303_v1 }
 0x29f   :  { %1345 = vmatpush.msrb.mxu1 %v1296_v22  ;;  %1326 = vmatpush.msrb.mxu0 %v1262_v25 }
 0x2a0   :  { %1363 = vmatpush.msrb.mxu2 %v1269_v15  ;;  %1383 = vmatpush.msrb.mxu3 %v1301_v16 }
 0x2a1   :  { %1346 = vmatpush.msrb.mxu1 %v1294_v26  ;;  %1327 = vmatpush.msrb.mxu0 %v1260_v29 }
 0x2a2   :  { %1364 = vmatpush.msrb.mxu2 %v1267_v19  ;;  %1384 = vmatpush.msrb.mxu3 %v1299_v20 }
 0x2a3   :  { %1347 = vmatpush.msrb.mxu1 %v1292_v30  ;;  %1328 = vmatpush.msrb.mxu0 %v1258_v33 }
 0x2a4   :  { %1365 = vmatpush.msrb.mxu2 %v1265_v23  ;;  %1385 = vmatpush.msrb.mxu3 %v1297_v24 }
 0x2a5   :  { %1348 = vmatpush.msrb.mxu1 %v1290_v34  ;;  %1329 = vmatpush.msrb.mxu0 %v1256_v37 }
 0x2a6   :  { %1366 = vmatpush.msrb.mxu2 %v1263_v27  ;;  %1386 = vmatpush.msrb.mxu3 %v1295_v28 }
 0x2a7   :  { %1349 = vmatpush.msrb.mxu1 %v1288_v38  ;;  %1330 = vmatpush.msrb.mxu0 %v1254_v41 }
 0x2a8   :  { %1367 = vmatpush.msrb.mxu2 %v1261_v31  ;;  %1387 = vmatpush.msrb.mxu3 %v1293_v32 }
 0x2a9   :  { %1350 = vmatpush.msrb.mxu1 %v1286_v42  ;;  %1331 = vmatpush.msrb.mxu0 %v1252_v45 }
 0x2aa   :  { %1368 = vmatpush.msrb.mxu2 %v1259_v35  ;;  %1388 = vmatpush.msrb.mxu3 %v1291_v36 }
 0x2ab   :  { %1351 = vmatpush.msrb.mxu1 %v1284_v46  ;;  %1332 = vmatpush.msrb.mxu0 %v1250_v49 }
 0x2ac   :  { %1369 = vmatpush.msrb.mxu2 %v1257_v39  ;;  %1389 = vmatpush.msrb.mxu3 %v1289_v40 }
 0x2ad   :  { %1352 = vmatpush.msrb.mxu1 %v1282_v50  ;;  %1333 = vmatpush.msrb.mxu0 %v1248_v53 }
 0x2ae   :  { %1370 = vmatpush.msrb.mxu2 %v1255_v43  ;;  %1390 = vmatpush.msrb.mxu3 %v1287_v44 }
 0x2af   :  { %1353 = vmatpush.msrb.mxu1 %v1280_v54 }
 0x2b0   :  { %1371 = vmatpush.msrb.mxu2 %v1253_v47  ;;  %1391 = vmatpush.msrb.mxu3 %v1285_v48 }
 0x2b2   :  { %1372 = vmatpush.msrb.mxu2 %v1251_v51  ;;  %1392 = vmatpush.msrb.mxu3 %v1283_v52 }
 0x2b4   :  { %1373 = vmatpush.msrb.mxu2 %v1249_v55  ;;  %1393 = vmatpush.msrb.mxu3 %v1281_v56 }
 0x30a   :  { %v1025_v2 = vpop.f32.mrf.mxu0  ;;  %v1045_v4 = vpop.f32.mrf.mxu1 }
 0x30b   :  { %v1026_v3 = vadd.f32 %v1429_v63, %v1025_v2  ;;  %v1159_v63 = vperm.slane %v1156_v57, 1 }
 0x30d   :  { %v1046_v5 = vadd.f32 %v1045_v4, %v1026_v3 }
 0x311   :  { %v1085_v8 = vpop.f32.mrf.mxu3 }
 0x318   :  { %v1065_v6 = vpop.f32.mrf.mxu2 }
 0x319   :  { %v1066_v7 = vadd.f32 %v1065_v6, %v1046_v5 }
 0x31b   :  { %v1086_v9 = vadd.f32 %v1085_v8, %v1066_v7  ;;  %v1312_v8 = vld [vmem:[%s1665_s8] sm:$0x3] }
 0x31c   :  { %v1315_v14 = vperm.slane %v1312_v8, 1 }
 0x31d   :  { %v1088_v10 = vmax.f32 %v1086_v9, 0.0  ;;  %v1314_v9 = vperm.slane %v1312_v8, 0 }
 0x31f   :  { %1089 = vst [vmem:[#allocation4] sm:$0x1f] %v1088_v10 }
 0x326   :  { %v1090_v11 = vld [vmem:[#allocation4 + $0x1] sm:$0xf] }
 0x327   :  { %v1091_v12 = vld [vmem:[#allocation4] sm:$0xf]  ;;  %1178 = vmatmul.f32.vlgmr.msra.gmra.mxu0 %v1090_v11  ;;  %1218 = vmatmul.f32.vlgmr.msra.gmra.mxu2 %v1090_v11 }
 0x328   :  { %1198 = vmatmul.f32.vlgmr.msra.gmra.mxu1 %v1091_v12  ;;  %1238 = vmatmul.f32.vlgmr.msra.gmra.mxu3 %v1091_v12 }
 0x3a4   :  { %v1179_v59 = vpop.f32.mrf.mxu0 }
 0x3a5   :  { %v1180_v60 = vadd.f32 %v1179_v59, %v1158_v58  ;;  %v1199_v61 = vpop.f32.mrf.mxu1 }
 0x3a7   :  { %v1200_v62 = vadd.f32 %v1199_v61, %v1180_v60 }
 0x3a9   :  { %v1242_v0 = vmax.f32 %v1200_v62, 0.0 }
 0x3aa   :  { %v1219_v1 = vpop.f32.mrf.mxu2 }
 0x3ab   :  { %1244 = vst [vmem:[#allocation5] ss:$2 sm:$0xf] %v1242_v0  ;;  %v1220_v2 = vadd.f32 %v1219_v1, %v1159_v63  ;;  %v1239_v3 = vpop.f32.mrf.mxu3 }
 0x3ad   :  { %v1240_v4 = vadd.f32 %v1239_v3, %v1220_v2 }
 0x3af   :  { %v1243_v5 = vmax.f32 %v1240_v4, 0.0 }
 0x3b1   :  { %1245 = vst [vmem:[#allocation5 + $0x1] ss:$2 sm:$0xf] %v1243_v5 }
 0x3b8   :  { %v1246_v6 = vld [vmem:[#allocation5 + $0x1] sm:$0x7f] }
 0x3b9   :  { %v1247_v7 = vld [vmem:[#allocation5] sm:$0x7f]  ;;  %1334 = vmatmul.f32.vlgmr.msrb.gmra.mxu0 %v1246_v6  ;;  %1374 = vmatmul.f32.vlgmr.msrb.gmra.mxu2 %v1246_v6 }
 0x3ba   :  { %1354 = vmatmul.f32.vlgmr.msrb.gmra.mxu1 %v1247_v7  ;;  %1394 = vmatmul.f32.vlgmr.msrb.gmra.mxu3 %v1247_v7 }
 0x436   :  { %v1335_v10 = vpop.f32.mrf.mxu0 }
 0x437   :  { %v1336_v11 = vadd.f32 %v1335_v10, %v1314_v9  ;;  %v1355_v12 = vpop.f32.mrf.mxu1 }
 0x439   :  { %v1356_v13 = vadd.f32 %v1355_v12, %v1336_v11 }
 0x43b   :  { %1398 = vst [vmem:[#allocation6] ss:$2 sm:$0x7f] %v1356_v13 }
 0x43c   :  { %v1375_v15 = vpop.f32.mrf.mxu2 }
 0x43d   :  { %v1376_v16 = vadd.f32 %v1375_v15, %v1315_v14  ;;  %v1395_v17 = vpop.f32.mrf.mxu3 }
 0x43f   :  { %v1396_v18 = vadd.f32 %v1395_v17, %v1376_v16 }
 0x441   :  { %1399 = vst [vmem:[#allocation6 + $0x1] ss:$2 sm:$0x7f] %v1396_v18 }
 0x448   :  { %v1400_v19 = vld [vmem:[#allocation6] sm:$0xff]  ;;  %v1401_v20 = vld [vmem:[#allocation6 + $0x8] sm:$0xff] }
 0x449   :  { %1415 = vst [vmem:[%s1666_s9 + $0x10] sm:$0xff] %v1400_v19 }
 0x44a   :  { %1416 = vst [vmem:[%s1666_s9 + $0x18] sm:$0xff] %v1401_v20 }
 0x44b   :  { %1409 = vsyncpa [#allocation8], 1 }
 0x44c   :  { %1410 = vsyncpa [#allocation10], 1 }
 0x44d   :  { %1411 = vsyncpa [#allocation13], 1 }

</bundles_post_ra>
